<compile_context>
chip_gen: v5e
topology: v5e:2x2
jax: 0.10.0
libtpu: 0.0.40
codegen_flags: <defaults>
</compile_context>

<pallas_src>
import math
from functools import partial

import jax
import jax.numpy as jnp
from jax import lax
from jax.experimental import pallas as pl
from jax.experimental.pallas import tpu as pltpu


def _rel_sdpa_kernel(q_ref, k_ref, v_ref, r_ref, u_ref, vb_ref, o_ref, *,
                     scale, kv_len):
    N, S, K = q_ref.shape
    q = q_ref[...]                      # (N, S, K)   input dtype (bf16 in demo)
    r = r_ref[...]                      # (2*S_kv, K) per-head projected rel-pos
                                        #   table; row 0 is a zero pad row.
    u = u_ref[...]                      # (1, K)  u-bias, pre-scaled by 1/sqrt(K)
    vb = vb_ref[...]                    # (1, K)  v-bias, pre-scaled by 1/sqrt(K)

    # Single scale multiply per step; the biases are already scaled, so
    # q_s + u == (q + u_bias) / sqrt(K) and q_s + vb == (q + v_bias) / sqrt(K).
    q_s = q * scale

    # Position term, batch-stacked: r is shared across the batch, so all N*S
    # query rows form the M dim of one wide MXU matmul.
    q_v = (q_s + vb).reshape(N * S, K)
    bd_all = lax.dot_general(q_v, r, (((1,), (1,)), ((), ())),
                             preferred_element_type=jnp.float32)  # (N*S, 2*S_kv)

    # Per-batch: content matmul, relative shift, softmax, attn @ v.  N is small
    # here, so a static (trace-time) loop is fine.
    for n in range(N):
        k_n = k_ref[n]                  # (S_kv, K)
        v_n = v_ref[n]                  # (S_kv, V)

        q_u = q_s[n] + u                # (S, K)
        ac = lax.dot_general(q_u, k_n, (((1,), (1,)), ((), ())),
                             preferred_element_type=jnp.float32)   # (S, S_kv)

        # Transformer-XL relative shift as a single strided lane rotation
        # (XLU): row i is rolled by (S_kv + i) so that, with the zero-padded
        # leading column of bd,  rolled[i, j] = bd_unpadded[i, j - i + S_kv - 1]
        # for j < S_kv.  Lanes j >= S_kv do wrap around, but they are discarded
        # by the [:, :kv_len] slice below.
        slab = bd_all[n * S:(n + 1) * S, :]                        # (S, 2*S_kv)
        rolled = pltpu.roll(slab, shift=kv_len, axis=1,
                            stride=1, stride_axis=0)
        scores = ac + rolled[:, :kv_len]                           # (S, S_kv) f32

        # Numerically-stable softmax in f32; the divide goes to the EUP via
        # pl.reciprocal so the VALU only sees a multiply (approximate recip).
        m_ = jnp.max(scores, axis=-1, keepdims=True)
        e = jnp.exp(scores - m_)
        denom = jnp.sum(e, axis=-1, keepdims=True)
        attn = e * pl.reciprocal(denom, approx=True)

        out = jnp.dot(attn.astype(v_n.dtype), v_n,
                      preferred_element_type=jnp.float32)          # (S, V)
        o_ref[n] = out.astype(o_ref.dtype)


def relative_position_sdpa(q, k, v, pos_table, r_proj_weight, u_bias, v_bias):
    """Relative-position SDPA consuming the RelativePositionalEncoding table
    (masks=None, dropout=0.0, needs_weights=False)."""
    N, H, S, K = q.shape
    Nk, Hk, S_kv, Kk = k.shape
    assert (N, H, K) == (Nk, Hk, Kk)
    assert v.shape[:3] == (N, H, S_kv)
    V = v.shape[-1]
    D = H * K
    L = pos_table.shape[0]
    assert pos_table.shape == (L, D)
    assert r_proj_weight.shape == (D, D)
    assert u_bias.shape == (H, K) and v_bias.shape == (H, K)
    assert S == S_kv, "relative shift as written requires S == S_kv"
    assert L == 2 * S_kv - 1, "positional table must have length 2*S_kv - 1"

    scale = K ** (-0.5)
    Lp = 2 * S_kv   # padded table length: lane-aligned width for the roll

    # Hoisted r-projection: depends only on the head, so it is done once in XLA
    # (f32, HIGHEST precision) instead of per grid step, and the (L, D) table /
    # (D, D) weight never occupy VMEM.  Pad ONE zero row at the front and cast
    # to the matmul dtype.
    r_full = jnp.einsum('ld,od->lo', pos_table.astype(jnp.float32),
                        r_proj_weight.astype(jnp.float32),
                        precision=lax.Precision.HIGHEST)            # (L, D)
    r_heads = r_full.reshape(L, H, K).transpose(1, 0, 2)             # (H, L, K)
    r_heads = jnp.pad(r_heads, ((0, 0), (1, 0), (0, 0))).astype(q.dtype)

    # Fold the 1/sqrt(K) softmax scale into the tiny bias tables in f32 (free);
    # the kernel then needs a single q*scale multiply.
    u3 = (u_bias.astype(jnp.float32) * scale).reshape(H, 1, K).astype(q.dtype)
    v3 = (v_bias.astype(jnp.float32) * scale).reshape(H, 1, K).astype(q.dtype)

    kernel = partial(_rel_sdpa_kernel, scale=scale, kv_len=S_kv)

    # Grid (H,): one step per head over the FULL batch, so the per-head
    # r / u / v-bias blocks are DMA'd exactly H times and the fixed per-step
    # pipeline overhead is amortized over N batches.
    out = pl.pallas_call(
        kernel,
        out_shape=jax.ShapeDtypeStruct((N, H, S, V), q.dtype),
        grid_spec=pltpu.PrefetchScalarGridSpec(
            num_scalar_prefetch=0,
            grid=(H,),
            in_specs=[
                pl.BlockSpec((N, None, S, K), lambda h: (0, h, 0, 0)),
                pl.BlockSpec((N, None, S_kv, K), lambda h: (0, h, 0, 0)),
                pl.BlockSpec((N, None, S_kv, V), lambda h: (0, h, 0, 0)),
                pl.BlockSpec((None, Lp, K), lambda h: (h, 0, 0)),
                pl.BlockSpec((None, 1, K), lambda h: (h, 0, 0)),
                pl.BlockSpec((None, 1, K), lambda h: (h, 0, 0)),
            ],
            out_specs=pl.BlockSpec((N, None, S, V), lambda h: (0, h, 0, 0)),
        ),
        compiler_params=pltpu.CompilerParams(
            # Single independent head axis -> even split across v7x's 2 TCs
            # when H is even; megacore sharding stays available.
            dimension_semantics=("parallel",)),
    )(q, k, v, r_heads, u3, v3)
    return out, None


def relative_positional_encoding_table(encoding_dim, max_seq_len):
    """The `freqs` buffer of RelativePositionalEncoding (interleaved sin/cos)."""
    steps = jnp.arange(max_seq_len, dtype=jnp.float32)
    indices = jnp.arange(0, encoding_dim, 2, dtype=jnp.float32)
    inv_freq = jnp.exp(indices * (-math.log(10000.0) / encoding_dim))
    freqs = jnp.outer(steps, inv_freq)                        # (max, E/2)
    flipped = freqs[::-1]
    pos_half = jnp.stack([jnp.sin(flipped), jnp.cos(flipped)],
                         axis=-1).reshape(max_seq_len, encoding_dim)
    neg_half = jnp.stack([jnp.sin(-freqs[1:]), jnp.cos(-freqs[1:])],
                         axis=-1).reshape(max_seq_len - 1, encoding_dim)
    return jnp.concatenate([pos_half, neg_half], axis=0)      # (2*max-1, E)


def relative_positional_encoding_forward(freqs, seq_len, max_seq_len):
    """RelativePositionalEncoding.forward: slice freqs[max-S : max+S-1]."""
    assert seq_len <= max_seq_len
    return freqs[max_seq_len - seq_len:max_seq_len + seq_len - 1]


def _reference(q, k, v, pos_table, r_proj_weight, u_bias, v_bias):
    """Pure-JAX reference following the PyTorch code structure (pad/view shift)."""
    P = lax.Precision.HIGHEST
    N, H, S, K = q.shape
    r = jnp.einsum('ld,od->lo', pos_table, r_proj_weight, precision=P)
    L = r.shape[0]
    r = r.reshape(1, L, H, K).transpose(0, 2, 1, 3)                  # (1,H,L,K)
    r = jnp.broadcast_to(r, (N, H, L, K))
    q_u = q + u_bias.reshape(1, H, 1, K)
    q_v = q + v_bias.reshape(1, H, 1, K)
    bd = jnp.einsum('nhsk,nhlk->nhsl', q_v, r, precision=P)          # (N,H,S,L)
    x = jnp.pad(bd, ((0, 0), (0, 0), (0, 0), (1, 0)))
    x = x.reshape(N, H, L + 1, S)
    x = x[:, :, 1:, :]
    x = x.reshape(N, H, S, L)
    bd = x[..., :S] * (K ** -0.5)
    ac = jnp.einsum('nhsk,nhtk->nhst', q_u, k, precision=P) * (K ** -0.5)
    w = jax.nn.softmax(ac + bd, axis=-1)
    return jnp.einsum('nhst,nhtv->nhsv', w, v, precision=P)


if __name__ == "__main__":
    # Lane-friendly small shapes: head_dim 128 -> lane-dense output stores,
    # S = S_kv = 128 -> full-lane score tiles, 2*S = 256 padded table width,
    # N*S = 256 rows in the stacked bd matmul (fills the v6e/v7x MXU).
    N, H, S, K = 2, 2, 128, 128
    D = H * K                       # model / encoding dim = 256 (even)
    L = 2 * S - 1

    key = jax.random.PRNGKey(0)
    kq, kk, kv_, ku, kvb, kw = jax.random.split(key, 6)

    dt = jnp.bfloat16
    q = jax.random.normal(kq, (N, H, S, K), jnp.float32).astype(dt)
    k = jax.random.normal(kk, (N, H, S, K), jnp.float32).astype(dt)
    v = jax.random.normal(kv_, (N, H, S, K), jnp.float32).astype(dt)

    # xavier_normal_ style biases; r_proj: Linear(D, D, bias=False).
    std_bias = math.sqrt(2.0 / (H + K))
    u_bias = jax.random.normal(ku, (H, K), jnp.float32) * std_bias
    v_bias = jax.random.normal(kvb, (H, K), jnp.float32) * std_bias
    r_proj_weight = jax.random.normal(kw, (D, D), jnp.float32) / math.sqrt(D)

    # Positional table per the RelativePositionalEncoding module (max_seq_len=S,
    # so forward() returns the whole (2S-1, D) buffer).
    freqs_buf = relative_positional_encoding_table(D, S)
    pos_table = relative_positional_encoding_forward(freqs_buf, S, S)

    out, _ = relative_position_sdpa(q, k, v, pos_table, r_proj_weight,
                                    u_bias, v_bias)
    out = jax.block_until_ready(out)

    ref = _reference(q.astype(jnp.float32), k.astype(jnp.float32),
                     v.astype(jnp.float32), pos_table, r_proj_weight,
                     u_bias, v_bias)
    assert out.shape == (N, H, S, K)
    err = float(jnp.max(jnp.abs(out.astype(jnp.float32) - ref)))
    assert jnp.allclose(out.astype(jnp.float32), ref, atol=1.5e-1, rtol=1.5e-1), err
    print("KERNEL_OK")
</pallas_src>

<mosaic_0001>
module attributes {stable_mosaic.version = 11 : i64} {
  func.func @_rel_sdpa_kernel(%arg0: i32, %arg1: memref<2x1x128x128xbf16, #tpu.memory_space<vmem>>, %arg2: memref<2x1x128x128xbf16, #tpu.memory_space<vmem>>, %arg3: memref<2x1x128x128xbf16, #tpu.memory_space<vmem>>, %arg4: memref<1x256x128xbf16, #tpu.memory_space<vmem>>, %arg5: memref<1x1x128xbf16, #tpu.memory_space<vmem>>, %arg6: memref<1x1x128xbf16, #tpu.memory_space<vmem>>, %arg7: memref<2x1x128x128xbf16, #tpu.memory_space<vmem>>) attributes {dimension_semantics = [#tpu.dimension_semantics<parallel>], iteration_bounds = array<i64: 2>, scalar_prefetch = 0 : i64, scratch_operands = 0 : i64, tpu.core_type = #tpu.core_type<tc>, window_params = [{transform_indices = @transform_0, window_bounds = array<i64: 2, 1, 128, 128>}, {transform_indices = @transform_1, window_bounds = array<i64: 2, 1, 128, 128>}, {transform_indices = @transform_2, window_bounds = array<i64: 2, 1, 128, 128>}, {transform_indices = @transform_3, window_bounds = array<i64: 1, 256, 128>}, {transform_indices = @transform_4, window_bounds = array<i64: 1, 1, 128>}, {transform_indices = @transform_5, window_bounds = array<i64: 1, 1, 128>}, {transform_indices = @transform_6, window_bounds = array<i64: 2, 1, 128, 128>}]} {
    %c0 = arith.constant 0 : index
    %c0_0 = arith.constant 0 : index
    %c0_1 = arith.constant 0 : index
    %c0_2 = arith.constant 0 : index
    %0 = vector.load %arg1[%c0, %c0_0, %c0_1, %c0_2] : memref<2x1x128x128xbf16, #tpu.memory_space<vmem>>, vector<2x1x128x128xbf16>
    %1 = vector.shape_cast %0 : vector<2x1x128x128xbf16> to vector<2x128x128xbf16>
    %c0_3 = arith.constant 0 : index
    %c0_4 = arith.constant 0 : index
    %c0_5 = arith.constant 0 : index
    %2 = vector.load %arg4[%c0_3, %c0_4, %c0_5] : memref<1x256x128xbf16, #tpu.memory_space<vmem>>, vector<1x256x128xbf16>
    %3 = vector.shape_cast %2 : vector<1x256x128xbf16> to vector<256x128xbf16>
    %c0_6 = arith.constant 0 : index
    %c0_7 = arith.constant 0 : index
    %c0_8 = arith.constant 0 : index
    %4 = vector.load %arg5[%c0_6, %c0_7, %c0_8] : memref<1x1x128xbf16, #tpu.memory_space<vmem>>, vector<1x1x128xbf16>
    %5 = vector.shape_cast %4 : vector<1x1x128xbf16> to vector<1x128xbf16>
    %c0_9 = arith.constant 0 : index
    %c0_10 = arith.constant 0 : index
    %c0_11 = arith.constant 0 : index
    %6 = vector.load %arg6[%c0_9, %c0_10, %c0_11] : memref<1x1x128xbf16, #tpu.memory_space<vmem>>, vector<1x1x128xbf16>
    %7 = vector.shape_cast %6 : vector<1x1x128xbf16> to vector<1x128xbf16>
    %cst = arith.constant 8.837890e-02 : bf16
    %8 = vector.broadcast %cst : bf16 to vector<2x128x128xbf16>
    %9 = arith.mulf %1, %8 : vector<2x128x128xbf16>
    %10 = vector.shape_cast %7 : vector<1x128xbf16> to vector<1x1x128xbf16>
    %11 = vector.broadcast %10 : vector<1x1x128xbf16> to vector<2x128x128xbf16>
    %12 = arith.addf %9, %11 : vector<2x128x128xbf16>
    %13 = vector.shape_cast %12 : vector<2x128x128xbf16> to vector<256x128xbf16>
    %cst_12 = arith.constant dense<0.000000e+00> : vector<256x256xf32>
    %14 = tpu.matmul %13, %3, %cst_12 {dimension_numbers = #tpu.dot_dimension_numbers<[1], [1], [0], [0], [0, 0, 1, 0], [], []>} : vector<256x128xbf16>, vector<256x128xbf16>, vector<256x256xf32> -> vector<256x256xf32>
    %c0_13 = arith.constant 0 : index
    %c0_14 = arith.constant 0 : index
    %c0_15 = arith.constant 0 : index
    %c0_16 = arith.constant 0 : index
    %15 = vector.load %arg2[%c0_13, %c0_14, %c0_15, %c0_16] : memref<2x1x128x128xbf16, #tpu.memory_space<vmem>>, vector<1x1x128x128xbf16>
    %16 = vector.shape_cast %15 : vector<1x1x128x128xbf16> to vector<128x128xbf16>
    %c0_17 = arith.constant 0 : index
    %c0_18 = arith.constant 0 : index
    %c0_19 = arith.constant 0 : index
    %c0_20 = arith.constant 0 : index
    %17 = vector.load %arg3[%c0_17, %c0_18, %c0_19, %c0_20] : memref<2x1x128x128xbf16, #tpu.memory_space<vmem>>, vector<1x1x128x128xbf16>
    %18 = vector.shape_cast %17 : vector<1x1x128x128xbf16> to vector<128x128xbf16>
    %19 = vector.extract_strided_slice %9 {offsets = [0, 0, 0], sizes = [1, 128, 128], strides = [1, 1, 1]} : vector<2x128x128xbf16> to vector<1x128x128xbf16>
    %20 = vector.shape_cast %19 : vector<1x128x128xbf16> to vector<128x128xbf16>
    %21 = vector.broadcast %5 : vector<1x128xbf16> to vector<128x128xbf16>
    %22 = arith.addf %20, %21 : vector<128x128xbf16>
    %cst_21 = arith.constant dense<0.000000e+00> : vector<128x128xf32>
    %23 = tpu.matmul %22, %16, %cst_21 {dimension_numbers = #tpu.dot_dimension_numbers<[1], [1], [0], [0], [0, 0, 1, 0], [], []>} : vector<128x128xbf16>, vector<128x128xbf16>, vector<128x128xf32> -> vector<128x128xf32>
    %24 = vector.extract_strided_slice %14 {offsets = [0, 0], sizes = [128, 256], strides = [1, 1]} : vector<256x256xf32> to vector<128x256xf32>
    %c128_i32 = arith.constant 128 : i32
    %25 = tpu.dynamic_rotate %24 by %c128_i32 dim 1 {stride = 1 : si32, stride_dimension = 0 : si32} : vector<128x256xf32>, i32 -> vector<128x256xf32>
    %26 = vector.extract_strided_slice %25 {offsets = [0, 0], sizes = [128, 128], strides = [1, 1]} : vector<128x256xf32> to vector<128x128xf32>
    %27 = arith.addf %23, %26 : vector<128x128xf32>
    %cst_22 = arith.constant dense<0xFF800000> : vector<128xf32>
    %28 = vector.multi_reduction <maximumf>, %27, %cst_22 [1] : vector<128x128xf32> to vector<128xf32>
    %29 = vector.shape_cast %28 : vector<128xf32> to vector<128x1xf32>
    %30 = vector.broadcast %29 : vector<128x1xf32> to vector<128x128xf32>
    %31 = arith.subf %27, %30 : vector<128x128xf32>
    %32 = math.exp %31 : vector<128x128xf32>
    %cst_23 = arith.constant dense<0.000000e+00> : vector<128xf32>
    %33 = vector.multi_reduction <add>, %32, %cst_23 [1] : vector<128x128xf32> to vector<128xf32>
    %34 = vector.shape_cast %33 : vector<128xf32> to vector<128x1xf32>
    %35 = tpu.reciprocal %34 {approx = true} : vector<128x1xf32> -> vector<128x1xf32>
    %36 = vector.broadcast %35 : vector<128x1xf32> to vector<128x128xf32>
    %37 = arith.mulf %32, %36 : vector<128x128xf32>
    %38 = arith.truncf %37 : vector<128x128xf32> to vector<128x128xbf16>
    %cst_24 = arith.constant dense<0.000000e+00> : vector<128x128xf32>
    %39 = tpu.matmul %38, %18, %cst_24 {dimension_numbers = #tpu.dot_dimension_numbers<[1], [0], [0], [1], [0, 0, 1, 1], [], []>} : vector<128x128xbf16>, vector<128x128xbf16>, vector<128x128xf32> -> vector<128x128xf32>
    %40 = arith.truncf %39 : vector<128x128xf32> to vector<128x128xbf16>
    %c0_25 = arith.constant 0 : index
    %c0_26 = arith.constant 0 : index
    %c0_27 = arith.constant 0 : index
    %c0_28 = arith.constant 0 : index
    %41 = vector.load %arg7[%c0_25, %c0_26, %c0_27, %c0_28] : memref<2x1x128x128xbf16, #tpu.memory_space<vmem>>, vector<1x1x128x128xbf16>
    %42 = vector.shape_cast %41 : vector<1x1x128x128xbf16> to vector<128x128xbf16>
    %43 = vector.shape_cast %40 : vector<128x128xbf16> to vector<1x1x128x128xbf16>
    tpu.vector_store %arg7[%c0_25, %c0_26, %c0_27, %c0_28], %43 {strides = array<i32>} : memref<2x1x128x128xbf16, #tpu.memory_space<vmem>>, vector<1x1x128x128xbf16>,
    %c1 = arith.constant 1 : index
    %c0_29 = arith.constant 0 : index
    %c0_30 = arith.constant 0 : index
    %c0_31 = arith.constant 0 : index
    %44 = vector.load %arg2[%c1, %c0_29, %c0_30, %c0_31] : memref<2x1x128x128xbf16, #tpu.memory_space<vmem>>, vector<1x1x128x128xbf16>
    %45 = vector.shape_cast %44 : vector<1x1x128x128xbf16> to vector<128x128xbf16>
    %c1_32 = arith.constant 1 : index
    %c0_33 = arith.constant 0 : index
    %c0_34 = arith.constant 0 : index
    %c0_35 = arith.constant 0 : index
    %46 = vector.load %arg3[%c1_32, %c0_33, %c0_34, %c0_35] : memref<2x1x128x128xbf16, #tpu.memory_space<vmem>>, vector<1x1x128x128xbf16>
    %47 = vector.shape_cast %46 : vector<1x1x128x128xbf16> to vector<128x128xbf16>
    %48 = vector.extract_strided_slice %9 {offsets = [1, 0, 0], sizes = [1, 128, 128], strides = [1, 1, 1]} : vector<2x128x128xbf16> to vector<1x128x128xbf16>
    %49 = vector.shape_cast %48 : vector<1x128x128xbf16> to vector<128x128xbf16>
    %50 = vector.broadcast %5 : vector<1x128xbf16> to vector<128x128xbf16>
    %51 = arith.addf %49, %50 : vector<128x128xbf16>
    %cst_36 = arith.constant dense<0.000000e+00> : vector<128x128xf32>
    %52 = tpu.matmul %51, %45, %cst_36 {dimension_numbers = #tpu.dot_dimension_numbers<[1], [1], [0], [0], [0, 0, 1, 0], [], []>} : vector<128x128xbf16>, vector<128x128xbf16>, vector<128x128xf32> -> vector<128x128xf32>
    %53 = vector.extract_strided_slice %14 {offsets = [128, 0], sizes = [128, 256], strides = [1, 1]} : vector<256x256xf32> to vector<128x256xf32>
    %c128_i32_37 = arith.constant 128 : i32
    %54 = tpu.dynamic_rotate %53 by %c128_i32_37 dim 1 {stride = 1 : si32, stride_dimension = 0 : si32} : vector<128x256xf32>, i32 -> vector<128x256xf32>
    %55 = vector.extract_strided_slice %54 {offsets = [0, 0], sizes = [128, 128], strides = [1, 1]} : vector<128x256xf32> to vector<128x128xf32>
    %56 = arith.addf %52, %55 : vector<128x128xf32>
    %cst_38 = arith.constant dense<0xFF800000> : vector<128xf32>
    %57 = vector.multi_reduction <maximumf>, %56, %cst_38 [1] : vector<128x128xf32> to vector<128xf32>
    %58 = vector.shape_cast %57 : vector<128xf32> to vector<128x1xf32>
    %59 = vector.broadcast %58 : vector<128x1xf32> to vector<128x128xf32>
    %60 = arith.subf %56, %59 : vector<128x128xf32>
    %61 = math.exp %60 : vector<128x128xf32>
    %cst_39 = arith.constant dense<0.000000e+00> : vector<128xf32>
    %62 = vector.multi_reduction <add>, %61, %cst_39 [1] : vector<128x128xf32> to vector<128xf32>
    %63 = vector.shape_cast %62 : vector<128xf32> to vector<128x1xf32>
    %64 = tpu.reciprocal %63 {approx = true} : vector<128x1xf32> -> vector<128x1xf32>
    %65 = vector.broadcast %64 : vector<128x1xf32> to vector<128x128xf32>
    %66 = arith.mulf %61, %65 : vector<128x128xf32>
    %67 = arith.truncf %66 : vector<128x128xf32> to vector<128x128xbf16>
    %cst_40 = arith.constant dense<0.000000e+00> : vector<128x128xf32>
    %68 = tpu.matmul %67, %47, %cst_40 {dimension_numbers = #tpu.dot_dimension_numbers<[1], [0], [0], [1], [0, 0, 1, 1], [], []>} : vector<128x128xbf16>, vector<128x128xbf16>, vector<128x128xf32> -> vector<128x128xf32>
    %69 = arith.truncf %68 : vector<128x128xf32> to vector<128x128xbf16>
    %c1_41 = arith.constant 1 : index
    %c0_42 = arith.constant 0 : index
    %c0_43 = arith.constant 0 : index
    %c0_44 = arith.constant 0 : index
    %70 = vector.load %arg7[%c1_41, %c0_42, %c0_43, %c0_44] : memref<2x1x128x128xbf16, #tpu.memory_space<vmem>>, vector<1x1x128x128xbf16>
    %71 = vector.shape_cast %70 : vector<1x1x128x128xbf16> to vector<128x128xbf16>
    %72 = vector.shape_cast %69 : vector<128x128xbf16> to vector<1x1x128x128xbf16>
    tpu.vector_store %arg7[%c1_41, %c0_42, %c0_43, %c0_44], %72 {strides = array<i32>} : memref<2x1x128x128xbf16, #tpu.memory_space<vmem>>, vector<1x1x128x128xbf16>,
    return
  }
  func.func @transform_0(%arg0: i32) -> (i32, i32, i32, i32) {
    %c0_i32 = arith.constant 0 : i32
    %c0_i32_0 = arith.constant 0 : i32
    %c0_i32_1 = arith.constant 0 : i32
    %c0_i32_2 = arith.constant 0 : i32
    return %c0_i32, %arg0, %c0_i32_0, %c0_i32_1 : i32, i32, i32, i32
  }
  func.func @transform_1(%arg0: i32) -> (i32, i32, i32, i32) {
    %c0_i32 = arith.constant 0 : i32
    %c0_i32_0 = arith.constant 0 : i32
    %c0_i32_1 = arith.constant 0 : i32
    %c0_i32_2 = arith.constant 0 : i32
    return %c0_i32, %arg0, %c0_i32_0, %c0_i32_1 : i32, i32, i32, i32
  }
  func.func @transform_2(%arg0: i32) -> (i32, i32, i32, i32) {
    %c0_i32 = arith.constant 0 : i32
    %c0_i32_0 = arith.constant 0 : i32
    %c0_i32_1 = arith.constant 0 : i32
    %c0_i32_2 = arith.constant 0 : i32
    return %c0_i32, %arg0, %c0_i32_0, %c0_i32_1 : i32, i32, i32, i32
  }
  func.func @transform_3(%arg0: i32) -> (i32, i32, i32) {
    %c0_i32 = arith.constant 0 : i32
    %c0_i32_0 = arith.constant 0 : i32
    %c0_i32_1 = arith.constant 0 : i32
    return %arg0, %c0_i32, %c0_i32_0 : i32, i32, i32
  }
  func.func @transform_4(%arg0: i32) -> (i32, i32, i32) {
    %c0_i32 = arith.constant 0 : i32
    %c0_i32_0 = arith.constant 0 : i32
    %c0_i32_1 = arith.constant 0 : i32
    return %arg0, %c0_i32, %c0_i32_0 : i32, i32, i32
  }
  func.func @transform_5(%arg0: i32) -> (i32, i32, i32) {
    %c0_i32 = arith.constant 0 : i32
    %c0_i32_0 = arith.constant 0 : i32
    %c0_i32_1 = arith.constant 0 : i32
    return %arg0, %c0_i32, %c0_i32_0 : i32, i32, i32
  }
  func.func @transform_6(%arg0: i32) -> (i32, i32, i32, i32) {
    %c0_i32 = arith.constant 0 : i32
    %c0_i32_0 = arith.constant 0 : i32
    %c0_i32_1 = arith.constant 0 : i32
    %c0_i32_2 = arith.constant 0 : i32
    return %c0_i32, %arg0, %c0_i32_0, %c0_i32_1 : i32, i32, i32, i32
  }
}

</mosaic_0001>

<bundles_post_ra>
// kernel: tpu_custom_call.1
= control target key start
LH: loop header
LB: loop body
LE: loop exit
PB: predicated region body
PF: predicated region fallthrough
CT: control target
= control target key end

     0   :  { %s4439_s0 = inlined_call_operand.hbm [shape: bf16[2,2,128,128], index: 0, kind: input, shape index: {}]   ;;  %s4440_s1 = inlined_call_operand.hbm [shape: bf16[2,2,128,128], index: 1, kind: input, shape index: {}]   ;;  %s4441_s2 = inlined_call_operand.hbm [shape: bf16[2,2,128,128], index: 2, kind: input, shape index: {}]   ;;  %s4442_s3 = inlined_call_operand.hbm [shape: bf16[2,256,128], index: 3, kind: input, shape index: {}]   ;;  %s4443_s4 = inlined_call_operand.vmem [shape: bf16[2,1,128], index: 4, kind: input, shape index: {}]   ;;  %s4444_s5 = inlined_call_operand.vmem [shape: bf16[2,1,128], index: 5, kind: input, shape index: {}]   ;;  %s4445_s6 = inlined_call_operand.hbm [shape: bf16[2,2,128,128], index: 6, kind: output, shape index: {}]  }
   0x1   :  { %4453 = sst [smem:[#allocation28_spill]] %s4439_s0 }
   0x2   :  { %4454 = sst [smem:[#allocation29_spill]] %s4440_s1 }
   0x3   :  { %11 = vsyncpa [#allocation3], 0 }
   0x4   :  { %13 = vsyncpa [#allocation3 + $0x1], 0 }
   0x5   :  { %14 = vsyncpa [#allocation6], 0 }
   0x6   :  { %16 = vsyncpa [#allocation6 + $0x1], 0 }
   0x7   :  { %17 = vsyncpa [#allocation9], 0 }
   0x8   :  { %19 = vsyncpa [#allocation9 + $0x1], 0 }
   0x9   :  { %20 = vsyncpa [#allocation4], 0 }
   0xa   :  { %22 = vsyncpa [#allocation4 + $0x1], 0  ;;  %s3420_s21 = smov 0   ;;  %s3422_s22 = smov 0  }
   0xb   :  { %s3424_s23 = smov 0   ;;  %s3426_s24 = smov 0  }
   0xc LB: > { %4455 = sst [smem:[#allocation26_spill]] %s3336_s23  ;;  %s3441_s25 = sadd.s32 4294967295, %s3340_s24   ;;  %s3340_s24 = sphi %s3426_s24, %s4470_s24   ;;  %s3336_s23 = sphi %s3424_s23, %s4467_s23   ;;  %s3332_s22 = sphi %s3422_s22, %s4469_s22   ;;  %s3328_s21 = sphi %s3420_s21, %s4468_s21  }
   0xd   : > { %s2522_s26 = sadd.s32 4294967294, %s3340_s24   ;;  %s3445_s27 = sadd.s32 1, %s3340_s24  }
   0xe   : > { %s35_s28 = sadd.s32 1, %s3336_s23  ;;  %s32_s29 = ssub.s32 %s3340_s24, %s3445_s27 }
   0xf   : > { %p42_p0 = scmp.ne.s32.totalorder %s3336_s23, %s3332_s22  ;;  %p33_p1 = scmp.eq.s32.totalorder %s32_s29, 0 }
  0x10   : > { %p43_p2 = scmp.eq.s32.totalorder %s3340_s24, 0  ;;  %p48_p3 = scmp.ne.s32.totalorder %s3332_s22, %s3328_s21 }
  0x11   : > { %p49_p4 = scmp.eq.s32.totalorder %s3441_s25, 0  ;;  %p202_p7 = scmp.eq.s32.totalorder %s3441_s25, 1 }
  0x12   : > { %s3457_s30 = scalar_select %p33_p1, %s3336_s23, %s35_s28  }
  0x13   : > { %p3459_p5 = por %p43_p2, %p42_p0  ;;  %p3463_p6 = por %p49_p4, %p48_p3 }
  0x14   : > { %4456 = sst [smem:[#allocation27_spill]] %s3457_s30  ;;  %p208_p8 = scmp.eq.s32.totalorder %s2522_s26, 1 }
  0x15   : > { %p3468_p9 = por %p202_p7, %p42_p0  ;;  %p2524_p11 = scmp.ge.s32.totalorder %s3340_s24, 2 }
  0x16   : > { %p3472_p10 = por %p208_p8, %p48_p3 }
  0x17   : > { %224 = sbr.rel (%p2524_p11) target bundleno = 82 (0x52), region = 16 }
  0x1c   : > { %s3480_s11 = sand.u32 1, %s3336_s23   ;;  %s3483_s12 = sshll.u32 %s3340_s24, 6 }
  0x1d   : > { %s3486_s13 = sshll.u32 %s3480_s11, 7  ;;  %s4461_s0 = sld [smem:[#allocation28_spill]] }
  0x1e   : > { %s3021_s17 = scalar_select %p3459_p5, [#allocation0], [#allocation19] }
  0x1f   : > { %s232_s19 = scalar_lea.vmem [#allocation2], %s3486_s13  ;;  %s3342_s28 = smov 2048  }
  0x20   : > { %s252_s20 = sshll.u32 %s232_s19, 4  ;;  %s242_s26 = sld [smem:[%s3021_s17]]   ;;  %s253_s20 = int_to_ptr.vmem [resolvable:$true] %s252_s20 }
  0x21   : > { %3022 = sst [smem:[#allocation12]] (%p3459_p5), %s3342_s28  ;;  %s3343_s29 = smov 1024  }
  0x22   : > { %3023 = sst [smem:[#allocation12 + $0x1]] (%p3459_p5), %s3343_s29  ;;  %s3344_s14 = smov 16  }
  0x23   : > { %s237_s16 = scalar_lea.hbm %s4461_s0, %s3483_s12  ;;  %3024 = sst [smem:[#allocation12 + $0x2]] (%p3459_p5), %s3344_s14 }
  0x24   : > { %s250_s18 = sshll.u32 %s237_s16, 4  ;;  %s3345_s15 = smov 64   ;;  %s251_s18 = int_to_ptr.hbm [resolvable:$true] %s250_s18 }
  0x25   : > { %3025 = sst [smem:[#allocation12 + $0x3]] (%p3459_p5), %s3345_s15  ;;  %s3346_s19 = smov 4  }
  0x26   : > { %s2528_s16 = sshll.u32 %s242_s26, 26  ;;  %3026 = sst [smem:[#allocation12 + $0x4]] (%p3459_p5), %s3345_s15 }
  0x27   : > { %s2529_s17 = sadd.s32 134217728, %s2528_s16  ;;  %3027 = sst [smem:[#allocation12 + $0x5]] (%p3459_p5), %s3346_s19 }
  0x28   : > { %s229_s0 = scalar_lea.sflag [#allocation3], %s3480_s11  ;;  %s3347_s30 = smov [#allocation11]  }
  0x29   : > { %3028 = dma.general (%p3459_p5), %s251_s18, 2048, %s253_s20, %s229_s0, %s3347_s30, [#allocation12], %s2529_s17, 0  }
  0x2a   : > { %s275_s28 = sand.u32 1, %s3340_s24   ;;  %s4462_s1 = sld [smem:[#allocation29_spill]] }
  0x2b   : > { %s3029_s15 = scalar_select %p3459_p5, [#allocation0], [#allocation20] }
  0x2c   : > { %s279_s19 = scalar_lea.vmem [#allocation5], %s3486_s13  ;;  %s3348_s30 = smov 2048  }
  0x2d   : > { %s299_s23 = sshll.u32 %s279_s19, 4  ;;  %s289_s0 = sld [smem:[%s3029_s15]]   ;;  %s300_s23 = int_to_ptr.vmem [resolvable:$true] %s299_s23 }
  0x2e   : > { %3030 = sst [smem:[#allocation14]] (%p3459_p5), %s3348_s30  ;;  %s3349_s18 = smov 1024  }
  0x2f   : > { %3031 = sst [smem:[#allocation14 + $0x1]] (%p3459_p5), %s3349_s18  ;;  %s3350_s20 = smov 16  }
  0x30   : > { %s284_s14 = scalar_lea.hbm %s4462_s1, %s3483_s12  ;;  %3032 = sst [smem:[#allocation14 + $0x2]] (%p3459_p5), %s3350_s20 }
  0x31   : > { %s297_s16 = sshll.u32 %s284_s14, 4  ;;  %s3351_s17 = smov 64   ;;  %s298_s16 = int_to_ptr.hbm [resolvable:$true] %s297_s16 }
  0x32   : > { %3033 = sst [smem:[#allocation14 + $0x3]] (%p3459_p5), %s3351_s17  ;;  %s3352_s14 = smov 4  }
  0x33   : > { %s2533_s29 = sshll.u32 %s289_s0, 26  ;;  %3034 = sst [smem:[#allocation14 + $0x4]] (%p3459_p5), %s3351_s17 }
  0x34   : > { %s2534_s26 = sadd.s32 134217728, %s2533_s29  ;;  %3035 = sst [smem:[#allocation14 + $0x5]] (%p3459_p5), %s3352_s14 }
  0x35   : > { %s276_s15 = scalar_lea.sflag [#allocation6], %s275_s28  ;;  %s3353_s19 = smov [#allocation13]  }
  0x36   : > { %3036 = dma.general (%p3459_p5), %s298_s16, 2048, %s300_s23, %s276_s15, %s3353_s19, [#allocation14], %s2534_s26, 0  }
  0x37   : > { %s331_s0 = scalar_lea.hbm %s4441_s2, %s3483_s12  ;;  %s326_s29 = scalar_lea.vmem [#allocation7], %s3486_s13 }
  0x38   : > { %s3037_s20 = scalar_select %p3459_p5, [#allocation0], [#allocation21] }
  0x39   : > { %s344_s17 = sshll.u32 %s331_s0, 4  ;;  %s346_s28 = sshll.u32 %s326_s29, 4  ;;  %s345_s17 = int_to_ptr.hbm [resolvable:$true] %s344_s17  ;;  %s347_s28 = int_to_ptr.vmem [resolvable:$true] %s346_s28 }
  0x3a   : > { %s336_s14 = sld [smem:[%s3037_s20]]   ;;  %s3354_s23 = smov 2048  }
  0x3b   : > { %3038 = sst [smem:[#allocation16]] (%p3459_p5), %s3354_s23  ;;  %s3355_s16 = smov 1024  }
  0x3c   : > { %3039 = sst [smem:[#allocation16 + $0x1]] (%p3459_p5), %s3355_s16  ;;  %s3356_s26 = smov 16  }
  0x3d   : > { %3040 = sst [smem:[#allocation16 + $0x2]] (%p3459_p5), %s3356_s26  ;;  %s3357_s12 = smov 64  }
  0x3e   : > { %3041 = sst [smem:[#allocation16 + $0x3]] (%p3459_p5), %s3357_s12  ;;  %s3358_s18 = smov 4  }
  0x3f   : > { %3042 = sst [smem:[#allocation16 + $0x4]] (%p3459_p5), %s3357_s12  ;;  %s3359_s0 = smov [#allocation15]  }
  0x40   : > { %s2538_s19 = sshll.u32 %s336_s14, 26  ;;  %3043 = sst [smem:[#allocation16 + $0x5]] (%p3459_p5), %s3358_s18 }
  0x41   : > { %s2539_s30 = sadd.s32 134217728, %s2538_s19  ;;  %s2797_s20 = sshll.u32 %s3340_s24, 7 }
  0x42   : > { %3044 = dma.general (%p3459_p5), %s345_s17, 2048, %s347_s28, %s276_s15, %s3359_s0, [#allocation16], %s2539_s30, 0  }
  0x43   : > { %s373_s29 = scalar_lea.vmem [#allocation8], %s3486_s13  ;;  %s378_s14 = scalar_lea.hbm %s4442_s3, %s2797_s20 }
  0x44   : > { %s381_s23 = sshll.u32 %s373_s29, 4  ;;  %s379_s12 = sshll.u32 %s378_s14, 4  ;;  %s382_s23 = int_to_ptr.vmem [resolvable:$true] %s381_s23  ;;  %s380_s12 = int_to_ptr.hbm [resolvable:$true] %s379_s12 }
  0x45   : > { %s370_s19 = scalar_lea.sflag [#allocation9], %s3480_s11  ;;  %s3266_s1 = sshra.s32 %s380_s12, 4  ;;  %s3267_s1 = int_to_ptr.hbm [resolvable:$true] %s3266_s1 }
  0x46   : > { %s3268_s18 = scalar_lea.hbm %s3267_s1, 128  ;;  %s3272_s13 = scalar_lea.hbm %s4442_s3, 256 }
  0x47   : > { %p3269_p12 = scmp.ne.s32.totalorder %s3267_s1, %s3268_s18  ;;  %p3273_p1 = scmp.lt.s32.totalorder %s3267_s1, %s4442_s3 }
  0x48   : > { %p3274_p2 = scmp.lt.s32.totalorder %s3272_s13, %s3268_s18 }
  0x49   : > { %p3270_p13 = pnand %p3269_p12, %p3459_p5 }
  0x4a   : > { %p3275_p3 = por %p3274_p2, %p3273_p1 }
  0x4b   : > { %p3271_p0 = pneg %p3270_p13 }
  0x4d   : > { %p3276_p4 = pnand %p3275_p3, %p3271_p0 }
  0x4f   : > { %3279 = shalt.err (!%p3276_p4)
}
  0x50   : > { %s3360_s11 = smov 64   ;;  %s3361_s0 = smov 4  }
  0x51   : > { %3045 = dma.hbm_to_vmem [thread:$0]  (%p3459_p5), %s380_s12, 2048, %s382_s23, %s370_s19, %s3360_s11, %s3360_s11, %s3361_s0  }
  0x52 PF: > { %p2543_p7 = scmp.ge.s32.totalorder %s3340_s24, 1  ;;  %p401_p8 = scmp.lt.s32.totalorder %s3340_s24, 3 }
  0x54   : > { %p402_p12 = pnand %p2543_p7, %p401_p8 }
  0x55   : > { %s3572_s20 = sand.u32 (!%p402_p12), 1, %s3332_s22  }
  0x56   : > { %405 = sbr.rel (%p402_p12) target bundleno = 1819 (0x71b), region = 44  ;;  %s3575_s1 = sshll.u32 (!%p402_p12), %s3572_s20, 7 }
  0x57   : > { %s408_s29 = scalar_lea.sflag (!%p402_p12), [#allocation3], %s3572_s20  ;;  %s3579_s16 = scalar_lea.vmem (!%p402_p12), [#allocation2], %s3575_s1 }
  0x5b   : > { %3311 = dma.done.wait (%p3463_p6), %s408_s29, 2048  }
  0x5c   : > { %3313 = vsyncadd (%p3463_p6), %s408_s29, 4294965248  ;;  %s417_s7 = sand.u32 1, %s3441_s25   ;;  %s3587_s26 = scalar_lea.vmem [#allocation5], %s3575_s1 }
  0x5d   : > { %s418_s23 = scalar_lea.sflag [#allocation6], %s417_s7 }
  0x5e   : > { %3315 = dma.done.wait (%p3463_p6), %s418_s23, 4096  }
  0x5f   : > { %3317 = vsyncadd (%p3463_p6), %s418_s23, 4294963200  ;;  %s3594_s14 = scalar_lea.vmem [#allocation7], %s3575_s1  ;;  %s438_s12 = scalar_lea.sflag [#allocation9], %s3572_s20 }
  0x60   : > { %s3598_s19 = scalar_lea.vmem [#allocation8], %s3575_s1 }
  0x61   : > { %3319 = dma.done.wait (%p3463_p6), %s438_s12, 2048  }
  0x62   : > { %3321 = vsyncadd (%p3463_p6), %s438_s12, 4294965248  ;;  %v2805_v0 = vld [vmem:[%s3598_s19 + $0x38] sm:$0xff]  ;;  %v2804_v2 = vld [vmem:[%s3598_s19 + $0x30] sm:$0xff]  ;;  %p492_p5 = scmp.lt.s32.totalorder %s3441_s25, 1  ;;  %s3362_s11 = smov 256  }
  0x63   : > { %v2813_v1 = vld [vmem:[%s3598_s19 + $0x78] sm:$0xff]  ;;  %953 = vmatpush.bf16.xpose.msra.mxu0 %v2805_v0  ;;  %v2812_v3 = vld [vmem:[%s3598_s19 + $0x70] sm:$0xff]  ;;  %v2803_v4 = vld [vmem:[%s3598_s19 + $0x28] sm:$0xff]  ;;  %s3363_s0 = smov 264   ;;  %s3364_s29 = smov 272  }
  0x64   : > { %1042 = vmatpush.bf16.xpose.msra.mxu1 %v2813_v1  ;;  %v2811_v5 = vld [vmem:[%s3598_s19 + $0x68] sm:$0xff]  ;;  %v2802_v6 = vld [vmem:[%s3598_s19 + $0x20] sm:$0xff]  ;;  %s3614_s8 = scalar_select %p492_p5, %s3441_s25, 1  ;;  %v2801_v8 = vld [vmem:[%s3598_s19 + $0x18] sm:$0xff] }
  0x65   : > { %v2810_v7 = vld [vmem:[%s3598_s19 + $0x60] sm:$0xff]  ;;  %v2809_v9 = vld [vmem:[%s3598_s19 + $0x58] sm:$0xff]  ;;  %v2800_v17 = vld [vmem:[%s3598_s19 + $0x10] sm:$0xff]  ;;  %s3365_s7 = smov 280   ;;  %s3366_s23 = smov 288  }
  0x66   : > { %v2848_v10 = vld [vmem:[%s3579_s16] sm:$0xff]   ;;  %s497_s17 = scalar_lea.vmem %s4444_s5, %s3614_s8  ;;  %v2808_v18 = vld [vmem:[%s3598_s19 + $0x50] sm:$0xff]  ;;  %v2799_v25 = vld [vmem:[%s3598_s19 + $0x8] sm:$0xff]  ;;  %s494_s30 = scalar_lea.vmem %s4443_s4, %s3614_s8 }
  0x67   : > { %v2849_v11 = vunpack.c.l.bf16 %v2848_v10  ;;  %v2850_v12 = vunpack.c.h.bf16 %v2848_v10  ;;  %v563_v13 = vld [vmem:[%s497_s17] sm:$0x1]  ;;  %v2807_v26 = vld [vmem:[%s3598_s19 + $0x48] sm:$0xff]  ;;  %v2821_v32 = vld [vmem:[%s3587_s26 + $0x38] sm:$0xff]  ;;  %s3367_s12 = smov 296   ;;  %s3369_s8 = smov 320  }
  0x68   : > { %v661_v16 = vpack.i.b16 %v563_v13, %v563_v13  ;;  %v2991_v27 = vld [vmem:[%s3579_s16 + $0x8] sm:$0xff]   ;;  %1417 = vmatpush.bf16.xpose.msra.mxu2 %v2821_v32  ;;  %v2798_v37 = vld [vmem:[%s3598_s19] sm:$0xff]  ;;  %v2992_v46 = vld [vmem:[%s3579_s16 + $0x10] sm:$0xff]   ;;  %s3370_s18 = smov 312   ;;  %s3371_s15 = smov 328  }
  0x69   : > { %v596_v14 = vmul.f32 0.088378906, %v2849_v11  ;;  %v597_v15 = vmul.f32 0.088378906, %v2850_v12  ;;  %v2853_v30 = vunpack.c.l.bf16 %v2991_v27  ;;  %v2854_v31 = vunpack.c.h.bf16 %v2991_v27  ;;  %v2806_v38 = vld [vmem:[%s3598_s19 + $0x40] sm:$0xff]  ;;  %v2820_v51 = vld [vmem:[%s3587_s26 + $0x30] sm:$0xff]  ;;  %v2819_v56 = vld [vmem:[%s3587_s26 + $0x28] sm:$0xff]  ;;  %s3368_s19 = smov 304  }
  0x6a   : > { %v663_v21 = vperm.slane %v661_v16, 0  ;;  %v2857_v49 = vunpack.c.l.bf16 %v2992_v46  ;;  %v2858_v50 = vunpack.c.h.bf16 %v2992_v46  ;;  %v2993_v0 = vld [vmem:[%s3579_s16 + $0x18] sm:$0xff]   ;;  %v2814_v46 = vld [vmem:[%s3587_s26] sm:$0xff]  ;;  %s4447_s17 = smov 336   ;;  %s3373_s13 = smov 344  }
  0x6b   : > { %954 = vmatpush.bf16.xpose.msra.mxu0 %v2804_v2  ;;  %v628_v19 = vpack.c.bf16 %v596_v14, %v596_v14  ;;  %v629_v20 = vpack.c.bf16 %v597_v15, %v597_v15  ;;  %v598_v35 = vmul.f32 0.088378906, %v2853_v30  ;;  %v599_v36 = vmul.f32 0.088378906, %v2854_v31  ;;  %v2817_v10 = vld [vmem:[%s3587_s26 + $0x18] sm:$0xff]  ;;  %v2815_v31 = vld [vmem:[%s3587_s26 + $0x8] sm:$0xff]  ;;  %s3374_s28 = smov 352  }
  0x6c   : > { %1043 = vmatpush.bf16.xpose.msra.mxu1 %v2812_v3  ;;  %v3629_v24 = vunpack.c.l.bf16 %v663_v21  ;;  %v600_v54 = vmul.f32 0.088378906, %v2857_v49  ;;  %v601_v55 = vmul.f32 0.088378906, %v2858_v50  ;;  %v2861_v3 = vunpack.c.l.bf16 %v2993_v0 }
  0x6d   : > { %v3625_v22 = vunpack.c.l.bf16 %v628_v19  ;;  %v3627_v23 = vunpack.c.l.bf16 %v629_v20  ;;  %v630_v41 = vpack.c.bf16 %v598_v35, %v598_v35  ;;  %v631_v42 = vpack.c.bf16 %v599_v36, %v599_v36 }
  0x6e   : > { %v632_v59 = vpack.c.bf16 %v600_v54, %v600_v54  ;;  %v633_v60 = vpack.c.bf16 %v601_v55, %v601_v55 }
  0x6f   : > { %v697_v28 = vadd.f32 %v3629_v24, %v3625_v22  ;;  %v698_v29 = vadd.f32 %v3629_v24, %v3627_v23  ;;  %v3641_v44 = vunpack.c.l.bf16 %v630_v41  ;;  %v3643_v45 = vunpack.c.l.bf16 %v631_v42 }
  0x70   : > { %1418 = vmatpush.bf16.xpose.msra.mxu2 %v2820_v51  ;;  %v3652_v62 = vunpack.c.l.bf16 %v632_v59  ;;  %v3654_v63 = vunpack.c.l.bf16 %v633_v60 }
  0x71   : > { %v729_v33 = vpack.c.bf16 %v697_v28, %v697_v28  ;;  %v730_v34 = vpack.c.bf16 %v698_v29, %v698_v29  ;;  %v699_v47 = vadd.f32 %v3629_v24, %v3641_v44  ;;  %v700_v48 = vadd.f32 %v3629_v24, %v3643_v45 }
  0x72   : > { %v701_v1 = vadd.f32 %v3629_v24, %v3652_v62  ;;  %v702_v2 = vadd.f32 %v3629_v24, %v3654_v63 }
  0x73   : > { %955 = vmatpush.bf16.xpose.msra.mxu0 %v2803_v4  ;;  %v793_v39 = vunpack.c.l.b16 %v729_v33  ;;  %v794_v40 = vunpack.c.l.b16 %v730_v34  ;;  %v731_v52 = vpack.c.bf16 %v699_v47, %v699_v47  ;;  %v732_v53 = vpack.c.bf16 %v700_v48, %v700_v48  ;;  %v562_v47 = vld [vmem:[%s494_s30] sm:$0x1]  ;;  %s4449_s30 = smov 360  }
  0x74   : > { %1044 = vmatpush.bf16.xpose.msra.mxu1 %v2811_v5  ;;  %v2862_v4 = vunpack.c.h.bf16 %v2993_v0  ;;  %v2818_v5 = vld [vmem:[%s3587_s26 + $0x20] sm:$0xff]  ;;  %v1164_v48 = vpack.i.b16 %v562_v47, %v562_v47 }
  0x75   : > { %v825_v43 = vpack.c.b16 %v794_v40, %v793_v39  ;;  %v795_v57 = vunpack.c.l.b16 %v731_v52  ;;  %v796_v58 = vunpack.c.l.b16 %v732_v53  ;;  %v2995_v39 = vld [vmem:[%s3579_s16 + $0x28] sm:$0xff]  }
  0x76   : > { %v2869_v40 = vunpack.c.l.bf16 %v2995_v39  ;;  %v2870_v41 = vunpack.c.h.bf16 %v2995_v39  ;;  %v1166_v51 = vperm.slane %v1164_v48, 0 }
  0x77   : > { %v826_v61 = vpack.c.b16 %v796_v58, %v795_v57 }
  0x78   : > { %1419 = vmatpush.bf16.xpose.msra.mxu2 %v2819_v56  ;;  %v606_v49 = vmul.f32 0.088378906, %v2869_v40  ;;  %v607_v50 = vmul.f32 0.088378906, %v2870_v41  ;;  %v3688_v54 = vunpack.c.l.bf16 %v1166_v51 }
  0x7a   : > { %v638_v55 = vpack.c.bf16 %v606_v49, %v606_v49  ;;  %v639_v56 = vpack.c.bf16 %v607_v50, %v607_v50  ;;  %v1168_v57 = vadd.f32 %v3688_v54, %v3625_v22  ;;  %v1169_v58 = vadd.f32 %v3688_v54, %v3627_v23 }
  0x7b   : > { %956 = vmatpush.bf16.xpose.msra.mxu0 %v2802_v6  ;;  %v733_v6 = vpack.c.bf16 %v701_v1, %v701_v1  ;;  %v1173_v39 = vadd.f32 %v3688_v54, %v3654_v63 }
  0x7c   : > { %1045 = vmatpush.bf16.xpose.msra.mxu1 %v2810_v7  ;;  %v734_v7 = vpack.c.bf16 %v702_v2, %v702_v2  ;;  %v3694_v0 = vunpack.c.l.bf16 %v638_v55  ;;  %v3696_v1 = vunpack.c.l.bf16 %v639_v56 }
  0x7d   : > { %v797_v11 = vunpack.c.l.b16 %v733_v6  ;;  %v1170_v6 = vadd.f32 %v3688_v54, %v3641_v44 }
  0x7e   : > { %v798_v12 = vunpack.c.l.b16 %v734_v7  ;;  %v1171_v7 = vadd.f32 %v3688_v54, %v3643_v45 }
  0x80   : > { %1420 = vmatpush.bf16.xpose.msra.mxu2 %v2818_v5  ;;  %v827_v15 = vpack.c.b16 %v798_v12, %v797_v11  ;;  %v708_v5 = vadd.f32 %v3629_v24, %v3696_v1 }
  0x83   : > { %957 = vmatpush.bf16.xpose.msra.mxu0 %v2801_v8  ;;  %v602_v8 = vmul.f32 0.088378906, %v2861_v3  ;;  %v2996_v3 = vld [vmem:[%s3579_s16 + $0x30] sm:$0xff]  }
  0x84   : > { %1046 = vmatpush.bf16.xpose.msra.mxu1 %v2809_v9  ;;  %v603_v9 = vmul.f32 0.088378906, %v2862_v4  ;;  %v707_v4 = vadd.f32 %v3629_v24, %v3694_v0  ;;  %v2873_v22 = vunpack.c.l.bf16 %v2996_v3  ;;  %v2874_v23 = vunpack.c.h.bf16 %v2996_v3 }
  0x85   : > { %v634_v13 = vpack.c.bf16 %v602_v8, %v602_v8  ;;  %v1185_v8 = vpack.c.bf16 %v1171_v7, %v1170_v6 }
  0x86   : > { %v635_v14 = vpack.c.bf16 %v603_v9, %v603_v9  ;;  %v739_v9 = vpack.c.bf16 %v707_v4, %v707_v4  ;;  %v608_v11 = vmul.f32 0.088378906, %v2873_v22  ;;  %v609_v12 = vmul.f32 0.088378906, %v2874_v23 }
  0x87   : > { %v3663_v16 = vunpack.c.l.bf16 %v634_v13 }
  0x88   : > { %1421 = vmatpush.bf16.xpose.msra.mxu2 %v2817_v10  ;;  %v740_v10 = vpack.c.bf16 %v708_v5, %v708_v5  ;;  %v803_v13 = vunpack.c.l.b16 %v739_v9 }
  0x89   : > { %v703_v19 = vadd.f32 %v3629_v24, %v3663_v16  ;;  %v1174_v63 = vadd.f32 %v3688_v54, %v3663_v16 }
  0x8b   : > { %958 = vmatpush.bf16.xpose.msra.mxu0 %v2800_v17  ;;  %v3665_v17 = vunpack.c.l.bf16 %v635_v14  ;;  %v735_v27 = vpack.c.bf16 %v703_v19, %v703_v19  ;;  %v804_v14 = vunpack.c.l.b16 %v740_v10 }
  0x8c   : > { %1047 = vmatpush.bf16.xpose.msra.mxu1 %v2808_v18  ;;  %v2994_v18 = vld [vmem:[%s3579_s16 + $0x20] sm:$0xff]  }
  0x8d   : > { %v704_v20 = vadd.f32 %v3629_v24, %v3665_v17  ;;  %v2865_v21 = vunpack.c.l.bf16 %v2994_v18  ;;  %v799_v32 = vunpack.c.l.b16 %v735_v27  ;;  %v830_v19 = vpack.c.b16 %v804_v14, %v803_v13 }
  0x8e   : > { %v1175_v51 = vadd.f32 %v3688_v54, %v3665_v17 }
  0x8f   : > { %v736_v28 = vpack.c.bf16 %v704_v20, %v704_v20  ;;  %v604_v29 = vmul.f32 0.088378906, %v2865_v21 }
  0x91   : > { %v800_v33 = vunpack.c.l.b16 %v736_v28  ;;  %v636_v34 = vpack.c.bf16 %v604_v29, %v604_v29 }
  0x93   : > { %959 = vmatpush.bf16.xpose.msra.mxu0 %v2799_v25  ;;  %v2866_v25 = vunpack.c.h.bf16 %v2994_v18  ;;  %v828_v36 = vpack.c.b16 %v800_v33, %v799_v32  ;;  %v641_v18 = vpack.c.bf16 %v609_v12, %v609_v12 }
  0x94   : > { %1048 = vmatpush.bf16.xpose.msra.mxu1 %v2807_v26  ;;  %v2816_v26 = vld [vmem:[%s3587_s26 + $0x10] sm:$0xff] }
  0x95   : > { %1422 = vmatpush.bf16.xpose.msra.mxu2 %v2816_v26  ;;  %v605_v30 = vmul.f32 0.088378906, %v2866_v25  ;;  %v3709_v21 = vunpack.c.l.bf16 %v641_v18  ;;  %v2997_v25 = vld [vmem:[%s3579_s16 + $0x38] sm:$0xff]  }
  0x96   : > { %v2877_v26 = vunpack.c.l.bf16 %v2997_v25  ;;  %v2878_v27 = vunpack.c.h.bf16 %v2997_v25 }
  0x97   : > { %v637_v35 = vpack.c.bf16 %v605_v30, %v605_v30  ;;  %v710_v45 = vadd.f32 %v3629_v24, %v3709_v21 }
  0x98   : > { %v610_v30 = vmul.f32 0.088378906, %v2877_v26 }
  0x99   : > { %v742_v29 = vpack.c.bf16 %v710_v45, %v710_v45 }
  0x9b   : > { %960 = vmatpush.bf16.xpose.msra.mxu0 %v2798_v37  ;;  %v3674_v37 = vunpack.c.l.bf16 %v636_v34  ;;  %v806_v33 = vunpack.c.l.b16 %v742_v29  ;;  %v642_v34 = vpack.c.bf16 %v610_v30, %v610_v30 }
  0x9c   : > { %1049 = vmatpush.bf16.xpose.msra.mxu1 %v2806_v38  ;;  %v3676_v38 = vunpack.c.l.bf16 %v637_v35 }
  0x9d   : > { %1423 = vmatpush.bf16.xpose.msra.mxu2 %v2815_v31  ;;  %v705_v42 = vadd.f32 %v3629_v24, %v3674_v37  ;;  %v611_v31 = vmul.f32 0.088378906, %v2878_v27  ;;  %v3720_v41 = vunpack.c.l.bf16 %v642_v34  ;;  %v1176_v16 = vadd.f32 %v3688_v54, %v3674_v37 }
  0x9e   : > { %v1177_v17 = vadd.f32 %v3688_v54, %v3676_v38  ;;  %v1178_v37 = vadd.f32 %v3688_v54, %v3694_v0 }
  0x9f   : > { %v737_v52 = vpack.c.bf16 %v705_v42, %v705_v42  ;;  %v643_v35 = vpack.c.bf16 %v611_v31, %v611_v31 }
  0xa1   : > { %v801_v59 = vunpack.c.l.b16 %v737_v52  ;;  %v3722_v42 = vunpack.c.l.bf16 %v643_v35 }
  0xa2   : > { %961 = vmatmul.bf16.vlgmr.msra.gmra.mxu0 %v825_v43 }
  0xa3   : > { %1050 = vmatmul.bf16.vlgmr.msra.gmra.mxu1 %v825_v43  ;;  %v706_v43 = vadd.f32 %v3629_v24, %v3676_v38  ;;  %v712_v47 = vadd.f32 %v3629_v24, %v3722_v42  ;;  %v1179_v38 = vadd.f32 %v3688_v54, %v3696_v1  ;;  %v1181_v1 = vadd.f32 %v3688_v54, %v3709_v21 }
  0xa5   : > { %1424 = vmatpush.bf16.xpose.msra.mxu2 %v2814_v46  ;;  %v738_v53 = vpack.c.bf16 %v706_v43, %v706_v43  ;;  %v711_v46 = vadd.f32 %v3629_v24, %v3720_v41  ;;  %v1189_v22 = vpack.c.bf16 %v1179_v38, %v1178_v37 }
  0xa7   : > { %v802_v60 = vunpack.c.l.b16 %v738_v53  ;;  %v743_v48 = vpack.c.bf16 %v711_v46, %v711_v46  ;;  %v1187_v53 = vpack.c.bf16 %v1175_v51, %v1174_v63 }
  0xa9   : > { %v829_v2 = vpack.c.b16 %v802_v60, %v801_v59  ;;  %v807_v49 = vunpack.c.l.b16 %v743_v48 }
  0xb2   : > { %966 = vmatmul.bf16.gmra.mxu0 %v826_v61 }
  0xb3   : > { %1055 = vmatmul.bf16.gmra.mxu1 %v826_v61  ;;  %v1184_v61 = vpack.c.bf16 %v1169_v58, %v1168_v57 }
  0xb5   : > { %1425 = vmatmul.bf16.vlgmr.msra.gmra.mxu2 %v1184_v61  ;;  %v1188_v61 = vpack.c.bf16 %v1177_v17, %v1176_v16 }
  0xc2   : > { %971 = vmatmul.bf16.gmra.mxu0 %v827_v15 }
  0xc3   : > { %1060 = vmatmul.bf16.gmra.mxu1 %v827_v15  ;;  %v640_v15 = vpack.c.bf16 %v608_v11, %v608_v11 }
  0xc5   : > { %1430 = vmatmul.bf16.gmra.mxu2 %v1185_v8  ;;  %v3707_v20 = vunpack.c.l.bf16 %v640_v15 }
  0xc7   : > { %v709_v44 = vadd.f32 %v3629_v24, %v3707_v20  ;;  %v1180_v0 = vadd.f32 %v3688_v54, %v3707_v20 }
  0xc9   : > { %v741_v28 = vpack.c.bf16 %v709_v44, %v709_v44  ;;  %v1190_v9 = vpack.c.bf16 %v1181_v1, %v1180_v0 }
  0xcb   : > { %v805_v32 = vunpack.c.l.b16 %v741_v28 }
  0xcd   : > { %v831_v40 = vpack.c.b16 %v806_v33, %v805_v32 }
  0xd2   : > { %976 = vmatmul.bf16.gmra.mxu0 %v828_v36 }
  0xd3   : > { %1065 = vmatmul.bf16.gmra.mxu1 %v828_v36  ;;  %v1172_v36 = vadd.f32 %v3688_v54, %v3652_v62  ;;  %v744_v62 = vpack.c.bf16 %v712_v47, %v712_v47 }
  0xd5   : > { %v1186_v43 = vpack.c.bf16 %v1173_v39, %v1172_v36  ;;  %v808_v50 = vunpack.c.l.b16 %v744_v62  ;;  %v1198_v36 = vlaneseq }
  0xd7   : > { %1435 = vmatmul.bf16.gmra.mxu2 %v1186_v43  ;;  %v832_v52 = vpack.c.b16 %v808_v50, %v807_v49  ;;  %v3775_v47 = vand.u32 127, %v1198_v36 }
  0xe2   : > { %981 = vmatmul.bf16.gmra.mxu0 %v829_v2 }
  0xe3   : > { %1070 = vmatmul.bf16.gmra.mxu1 %v829_v2 }
  0xe7   : > { %1440 = vmatmul.bf16.gmra.mxu2 %v1187_v53 }
  0xf2   : > { %986 = vmatmul.bf16.gmra.mxu0 %v830_v19 }
  0xf3   : > { %1075 = vmatmul.bf16.gmra.mxu1 %v830_v19 }
  0xf7   : > { %1445 = vmatmul.bf16.gmra.mxu2 %v1188_v61 }
 0x102   : > { %991 = vmatmul.bf16.gmra.mxu0 %v831_v40 }
 0x103   : > { %1080 = vmatmul.bf16.gmra.mxu1 %v831_v40  ;;  %v3773_v40 = vshrl.u32 %v1198_v36, 7 }
 0x105   : > { %v3778_v48 = vadd.s32 16, %v3773_v40  ;;  %vm1202_vm1 = vcmp.lt.s32.totalorder %v3775_v47, %v3773_v40  ;;  %v3791_v53 = vadd.s32 24, %v3773_v40  ;;  %v3821_v37 = vadd.s32 48, %v3773_v40 }
 0x106   : > { %v3824_v38 = vadd.s32 40, %v3773_v40 }
 0x107   : > { %1450 = vmatmul.bf16.gmra.mxu2 %v1189_v22  ;;  %vm1224_vm0 = vcmp.lt.s32.totalorder %v3775_v47, %v3778_v48  ;;  %vm1235_vm2 = vcmp.lt.s32.totalorder %v3775_v47, %v3791_v53  ;;  %vm1268_vm5 = vcmp.lt.s32.totalorder %v3775_v47, %v3821_v37 }
 0x108   : > { %vm1257_vm6 = vcmp.lt.s32.totalorder %v3775_v47, %v3824_v38 }
 0x112   : > { %996 = vmatmul.bf16.gmra.mxu0 %v832_v52 }
 0x113   : > { %1085 = vmatmul.bf16.gmra.mxu1 %v832_v52 }
 0x117   : > { %1455 = vmatmul.bf16.gmra.mxu2 %v1190_v9 }
 0x11f   : > { %v962_v55 = vpop.f32.mrf.mxu0 }
 0x120   : > { %v1051_v56 = vpop.f32.mrf.mxu1  ;;  %1193 = vrot.lane.b32.xlu0 %v962_v55, %s3362_s11  ;;  %v3794_v55 = vadd.s32 32, %v3773_v40 }
 0x122   : > { %vm1246_vm3 = vcmp.lt.s32.totalorder %v3775_v47, %v3794_v55 }
 0x127   : > { %v964_v57 = vpop.f32.mrf.mxu0 }
 0x128   : > { %v1053_v58 = vpop.f32.mrf.mxu1  ;;  %1196 = vrot.lane.b32.xlu0 %v1051_v56, %s3362_s11  ;;  %1206 = vrot.lane.b32.xlu1 %v964_v57, %s3363_s0  ;;  %v3797_v56 = vadd.s32 8, %v3773_v40 }
 0x12a   : > { %vm1213_vm4 = vcmp.lt.s32.totalorder %v3775_v47, %v3797_v56 }
 0x12f   : > { %v967_v59 = vpop.f32.mrf.mxu0 }
 0x130   : > { %v1056_v60 = vpop.f32.mrf.mxu1  ;;  %1210 = vrot.lane.b32.xlu1 %v1053_v58, %s3363_s0  ;;  %1217 = vrot.lane.b32.xlu2 %v967_v59, %s3364_s29 }
 0x137   : > { %v969_v2 = vpop.f32.mrf.mxu0 }
 0x138   : > { %v1058_v3 = vpop.f32.mrf.mxu1  ;;  %1221 = vrot.lane.b32.xlu2 %v1056_v60, %s3364_s29  ;;  %1228 = vrot.lane.b32.xlu0 %v969_v2, %s3365_s7  ;;  %v1426_v25 = vpop.f32.mrf.mxu2 }
 0x139   : > { %1232 = vrot.lane.b32.xlu1 %v1058_v3, %s3365_s7 }
 0x13f   : > { %v972_v4 = vpop.f32.mrf.mxu0 }
 0x140   : > { %v1061_v5 = vpop.f32.mrf.mxu1  ;;  %1239 = vrot.lane.b32.xlu2 %v972_v4, %s3366_s23  ;;  %v1428_v28 = vpop.f32.mrf.mxu2 }
 0x141   : > { %1243 = vrot.lane.b32.xlu0 %v1061_v5, %s3366_s23 }
 0x147   : > { %v974_v23 = vpop.f32.mrf.mxu0 }
 0x148   : > { %v1063_v6 = vpop.f32.mrf.mxu1  ;;  %1250 = vrot.lane.b32.xlu1 %v974_v23, %s3367_s12  ;;  %v1431_v32 = vpop.f32.mrf.mxu2 }
 0x149   : > { %1254 = vrot.lane.b32.xlu2 %v1063_v6, %s3367_s12 }
 0x14f   : > { %v977_v7 = vpop.f32.mrf.mxu0 }
 0x150   : > { %v1066_v8 = vpop.f32.mrf.mxu1  ;;  %v1433_v35 = vpop.f32.mrf.mxu2 }
 0x151   : > { %1261 = vrot.lane.b32.xlu2 %v977_v7, %s3368_s19  ;;  %v3843_v7 = vadd.s32 56, %v3773_v40 }
 0x153   : > { %vm1279_vm7 = vcmp.lt.s32.totalorder %v3775_v47, %v3843_v7 }
 0x157   : > { %v979_v10 = vpop.f32.mrf.mxu0 }
 0x158   : > { %v1068_v11 = vpop.f32.mrf.mxu1 }
 0x159   : > { %1265 = vrot.lane.b32.xlu2 %v1066_v8, %s3368_s19 }
 0x15a   : > { %v1436_v62 = vpop.f32.mrf.mxu2 }
 0x15f   : > { %v982_v12 = vpop.f32.mrf.mxu0 }
 0x160   : > { %v1071_v13 = vpop.f32.mrf.mxu1  ;;  %1283 = vrot.lane.b32.xlu1 %v982_v12, %s3369_s8 }
 0x161   : > { %1287 = vrot.lane.b32.xlu0 %v1071_v13, %s3369_s8  ;;  %1272 = vrot.lane.b32.xlu2 %v979_v10, %s3370_s18 }
 0x162   : > { %v1438_v58 = vpop.f32.mrf.mxu2 }
 0x167   : > { %v984_v14 = vpop.f32.mrf.mxu0 }
 0x168   : > { %v1073_v15 = vpop.f32.mrf.mxu1  ;;  %1294 = vrot.lane.b32.xlu1 %v984_v14, %s3371_s15 }
 0x169   : > { %1298 = vrot.lane.b32.xlu0 %v1073_v15, %s3371_s15  ;;  %1276 = vrot.lane.b32.xlu2 %v1068_v11, %s3370_s18  ;;  %v3863_v15 = vadd.s32 64, %v3773_v40 }
 0x16a   : > { %v1441_v23 = vpop.f32.mrf.mxu2 }
 0x16b   : > { %vm1290_vm8 = vcmp.lt.s32.totalorder %v3775_v47, %v3863_v15 }
 0x16f   : > { %v987_v18 = vpop.f32.mrf.mxu0 }
 0x170   : > { %v1076_v19 = vpop.f32.mrf.mxu1 }
 0x171   : > { %1309 = vrot.lane.b32.xlu2 %v1076_v19, %s4447_s17  ;;  %1305 = vrot.lane.b32.xlu0 %v987_v18, %s4447_s17  ;;  %s3376_s17 = smov 368  }
 0x172   : > { %v1443_v11 = vpop.f32.mrf.mxu2 }
 0x177   : > { %v989_v20 = vpop.f32.mrf.mxu0 }
 0x178   : > { %v1078_v21 = vpop.f32.mrf.mxu1 }
 0x179   : > { %1316 = vrot.lane.b32.xlu0 %v989_v20, %s3373_s13 }
 0x17a   : > { %v1446_v18 = vpop.f32.mrf.mxu2 }
 0x17f   : > { %v992_v44 = vpop.f32.mrf.mxu0 }
 0x180   : > { %v1081_v45 = vpop.f32.mrf.mxu1  ;;  %1327 = vrot.lane.b32.xlu1 %v992_v44, %s3374_s28  ;;  %v3873_v44 = vadd.s32 72, %v3773_v40 }
 0x181   : > { %1320 = vrot.lane.b32.xlu0 %v1078_v21, %s3373_s13 }
 0x182   : > { %vm1301_vm9 = vcmp.lt.s32.totalorder %v3775_v47, %v3873_v44 }
 0x187   : > { %v994_v26 = vpop.f32.mrf.mxu0 }
 0x188   : > { %v1083_v27 = vpop.f32.mrf.mxu1  ;;  %1338 = vrot.lane.b32.xlu2 %v994_v26, %s4449_s30  ;;  %v1448_v26 = vpop.f32.mrf.mxu2 }
 0x189   : > { %1331 = vrot.lane.b32.xlu0 %v1081_v45, %s3374_s28  ;;  %1342 = vrot.lane.b32.xlu1 %v1083_v27, %s4449_s30  ;;  %s4451_s30 = smov 376  }
 0x18a   : > { %v1218_v29 = vpop.permute.xlu2 %1217 }
 0x18f   : > { %v997_v30 = vpop.f32.mrf.mxu0 }
 0x191   : > { %1349 = vrot.lane.b32.xlu1 %v997_v30, %s3376_s17 }
 0x192   : > { %v1222_v31 = vpop.permute.xlu2 %1221  ;;  %v1194_v33 = vpop.permute.xlu0 %1193 }
 0x193   : > { %v1225_v51 = vsel %vm1224_vm0, %v1218_v29, %v1222_v31 }
 0x194   : > { %v3799_v57 = vadd.f32 %v1431_v32, %v1225_v51 }
 0x197   : > { %v999_v31 = vpop.f32.mrf.mxu0 }
 0x19a   : > { %v1240_v34 = vpop.permute.xlu2 %1239  ;;  %v1207_v39 = vpop.permute.xlu1 %1206 }
 0x19b   : > { %v1197_v43 = vpop.permute.xlu0 %1196 }
 0x19c   : > { %v1203_v52 = vsel %vm1202_vm1, %v1194_v33, %v1197_v43  ;;  %v3886_v33 = vadd.s32 88, %v3773_v40  ;;  %v3896_v43 = vadd.s32 96, %v3773_v40 }
 0x19d   : > { %v3801_v16 = vadd.f32 %v1426_v25, %v1203_v52  ;;  %v1182_v52 = vadd.f32 %v3688_v54, %v3720_v41 }
 0x19e   : > { %vm1323_vm10 = vcmp.lt.s32.totalorder %v3775_v47, %v3886_v33  ;;  %vm1334_vm11 = vcmp.lt.s32.totalorder %v3775_v47, %v3896_v43 }
 0x1a2   : > { %v1211_v49 = vpop.permute.xlu1 %1210 }
 0x1a3   : > { %v1255_v46 = vpop.permute.xlu2 %1254  ;;  %v1214_v3 = vsel %vm1213_vm4, %v1207_v39, %v1211_v49 }
 0x1a4   : > { %v3830_v22 = vadd.f32 %v1428_v28, %v1214_v3 }
 0x1aa   : > { %v1229_v50 = vpop.permute.xlu0 %1228 }
 0x1ab   : > { %v1262_v63 = vpop.permute.xlu2 %1261  ;;  %v1233_v17 = vpop.permute.xlu1 %1232 }
 0x1ac   : > { %v1236_v61 = vsel %vm1235_vm2, %v1229_v50, %v1233_v17 }
 0x1ad   : > { %v3828_v5 = vadd.f32 %v1433_v35, %v1236_v61 }
 0x1b1   : > { %1470 = vmax.xlane.f32.xlu2 %v3799_v57 }
 0x1b3   : > { %1466 = vmax.xlane.f32.xlu0 %v3801_v16  ;;  %v1244_v59 = vpop.permute.xlu0 %1243  ;;  %v1266_v60 = vpop.permute.xlu2 %1265 }
 0x1b4   : > { %v1247_v2 = vsel %vm1246_vm3, %v1240_v34, %v1244_v59  ;;  %v1269_v1 = vsel %vm1268_vm5, %v1262_v63, %v1266_v60 }
 0x1b5   : > { %v3826_v4 = vadd.f32 %v1436_v62, %v1247_v2  ;;  %v3848_v9 = vadd.f32 %v1441_v23, %v1269_v1 }
 0x1b9   : > { %1474 = vmax.xlane.f32.xlu2 %v3826_v4 }
 0x1ba   : > { %v1251_v6 = vpop.permute.xlu1 %1250 }
 0x1bb   : > { %1472 = vmax.xlane.f32.xlu0 %v3828_v5  ;;  %v1273_v0 = vpop.permute.xlu2 %1272  ;;  %1468 = vmax.xlane.f32.xlu1 %v3830_v22  ;;  %v1258_v8 = vsel %vm1257_vm6, %v1251_v6, %v1255_v46  ;;  %v3899_v46 = vadd.s32 104, %v3773_v40 }
 0x1bc   : > { %v3852_v10 = vadd.f32 %v1438_v58, %v1258_v8  ;;  %v1183_v58 = vadd.f32 %v3688_v54, %v3722_v42 }
 0x1bd   : > { %vm1345_vm12 = vcmp.lt.s32.totalorder %v3775_v47, %v3899_v46 }
 0x1be   : > { %v1191_v17 = vpack.c.bf16 %v1183_v58, %v1182_v52  ;;  %v2827_v52 = vld [vmem:[%s3594_s14 + $0x28] sm:$0xff] }
 0x1c0   : > { %1460 = vmatmul.bf16.gmra.mxu2 %v1191_v17 }
 0x1c3   : > { %1478 = vmax.xlane.f32.xlu0 %v3848_v9  ;;  %v1277_v12 = vpop.permute.xlu2 %1276  ;;  %1476 = vmax.xlane.f32.xlu1 %v3852_v10 }
 0x1c4   : > { %v1280_v13 = vsel %vm1279_vm7, %v1273_v0, %v1277_v12 }
 0x1c5   : > { %v3859_v14 = vadd.f32 %v1443_v11, %v1280_v13 }
 0x1c7   : > { %1480 = vmax.xlane.f32.xlu2 %v3859_v14 }
 0x1cb   : > { %v1310_v34 = vpop.permute.xlu2 %1309 }
 0x1d2   : > { %v1284_v20 = vpop.permute.xlu1 %1283 }
 0x1d3   : > { %v1288_v19 = vpop.permute.xlu0 %1287 }
 0x1d4   : > { %v1291_v21 = vsel %vm1290_vm8, %v1284_v20, %v1288_v19  ;;  %v1451_v20 = vpop.f32.mrf.mxu2 }
 0x1d5   : > { %v3870_v25 = vadd.f32 %v1446_v18, %v1291_v21 }
 0x1d7   : > { %1482 = vmax.xlane.f32.xlu0 %v3870_v25 }
 0x1da   : > { %v1295_v27 = vpop.permute.xlu1 %1294 }
 0x1db   : > { %v1299_v45 = vpop.permute.xlu0 %1298 }
 0x1dc   : > { %v1302_v28 = vsel %vm1301_vm9, %v1295_v27, %v1299_v45 }
 0x1dd   : > { %v3881_v29 = vadd.f32 %v1448_v26, %v1302_v28 }
 0x1df   : > { %1484 = vmax.xlane.f32.xlu1 %v3881_v29 }
 0x1e2   : > { %v1339_v62 = vpop.permute.xlu2 %1338 }
 0x1e3   : > { %v1306_v30 = vpop.permute.xlu0 %1305 }
 0x1eb   : > { %v1317_v32 = vpop.permute.xlu0 %1316  ;;  %1360 = vrot.lane.b32.xlu0 %v999_v31, %s4451_s30 }
 0x1f2   : > { %v1328_v36 = vpop.permute.xlu1 %1327 }
 0x1f3   : > { %v1321_v35 = vpop.permute.xlu0 %1320 }
 0x1f4   : > { %v3893_v39 = vsel %vm1323_vm10, %v1317_v32, %v1321_v35  ;;  %v2828_v35 = vld [vmem:[%s3594_s14 + $0x30] sm:$0xff] }
 0x1fb   : > { %v1332_v49 = vpop.permute.xlu0 %1331  ;;  %v1343_v50 = vpop.permute.xlu1 %1342 }
 0x1fc   : > { %v3908_v63 = vsel %vm1334_vm11, %v1328_v36, %v1332_v49  ;;  %v3913_v51 = vsel %vm1345_vm12, %v1339_v62, %v1343_v50  ;;  %v1453_v36 = vpop.f32.mrf.mxu2 }
 0x1fd   : > { %v3962_v50 = vadd.f32 %v1453_v36, %v3893_v39 }
 0x203   : > { %v3919_v61 = vpop.permute.xlu1 %1349 }
 0x224   : > { %v1471_v59 = vpop.xlane.xlu2 %1470 }
 0x225   : > { %v1500_v2 = vsub.f32 %v3799_v57, %v1471_v59  ;;  %v3932_v57 = vadd.s32 80, %v3773_v40  ;;  %v1456_v59 = vpop.f32.mrf.mxu2 }
 0x226   : > { %v1467_v60 = vpop.xlane.xlu0 %1466 }
 0x227   : > { %v1498_v3 = vsub.f32 %v3801_v16, %v1467_v60  ;;  %v1518_v23 = vmul.f32 1.442695, %v1500_v2  ;;  %vm1312_vm13 = vcmp.lt.s32.totalorder %v3775_v47, %v3932_v57 }
 0x228   : > { %v1313_v19 = vsel %vm1312_vm13, %v1306_v30, %v1310_v34 }
 0x229   : > { %v1514_v6 = vmul.f32 1.442695, %v1498_v3  ;;  %3138 = vpow2.f32 %v1518_v23  ;;  %v3946_v45 = vadd.f32 %v1451_v20, %v1313_v19 }
 0x22b   : > { %3140 = vpow2.f32 %v1514_v6 }
 0x22c   : > { %v1475_v34 = vpop.xlane.xlu2 %1474 }
 0x22d   : > { %v1502_v62 = vsub.f32 %v3826_v4, %v1475_v34  ;;  %v3968_v4 = vadd.f32 %v1456_v59, %v3908_v63  ;;  %v1458_v6 = vpop.f32.mrf.mxu2 }
 0x22e   : > { %v1473_v0 = vpop.xlane.xlu0 %1472  ;;  %v1469_v1 = vpop.xlane.xlu1 %1468  ;;  %v3979_v63 = vadd.f32 %v1458_v6, %v3913_v51 }
 0x22f   : > { %v1501_v41 = vsub.f32 %v3828_v5, %v1473_v0  ;;  %v1499_v42 = vsub.f32 %v3830_v22, %v1469_v1  ;;  %v3925_v8 = vpop.eup %3138  ;;  %v1522_v58 = vmul.f32 1.442695, %v1502_v62  ;;  %v2826_v0 = vld [vmem:[%s3594_s14 + $0x20] sm:$0xff]  ;;  %v2824_v1 = vld [vmem:[%s3594_s14 + $0x10] sm:$0xff] }
 0x230   : > { %1550 = vadd.xlane.f32.xlu2 %v3925_v8 }
 0x231   : > { %v1520_v11 = vmul.f32 1.442695, %v1501_v41  ;;  %v3927_v12 = vpop.eup %3140  ;;  %v1516_v13 = vmul.f32 1.442695, %v1499_v42  ;;  %v2823_v42 = vld [vmem:[%s3594_s14 + $0x8] sm:$0xff] }
 0x232   : > { %1546 = vadd.xlane.f32.xlu1 %v3927_v12 }
 0x233   : > { %3142 = vpow2.f32 %v1520_v11  ;;  %v2822_v11 = vld [vmem:[%s3594_s14] sm:$0xff] }
 0x234   : > { %3144 = vpow2.f32 %v1516_v13 }
 0x236   : > { %v1477_v16 = vpop.xlane.xlu1 %1476  ;;  %v1479_v26 = vpop.xlane.xlu0 %1478 }
 0x237   : > { %v1503_v22 = vsub.f32 %v3852_v10, %v1477_v16  ;;  %v1504_v27 = vsub.f32 %v3848_v9, %v1479_v26  ;;  %v1086_v10 = vpop.f32.mrf.mxu1  ;;  %v2829_v9 = vld [vmem:[%s3594_s14 + $0x38] sm:$0xff] }
 0x238   : > { %1666 = vmatpush.bf16.msra.mxu3 %v2829_v9 }
 0x239   : > { %v3934_v5 = vpop.eup %3142  ;;  %v1524_v21 = vmul.f32 1.442695, %v1503_v22  ;;  %v1526_v28 = vmul.f32 1.442695, %v1504_v27  ;;  %v3991_v22 = vadd.s32 112, %v3773_v40 }
 0x23a   : > { %v3936_v18 = vpop.eup %3144  ;;  %1552 = vadd.xlane.f32.xlu0 %v3934_v5  ;;  %v1481_v49 = vpop.xlane.xlu2 %1480 }
 0x23b   : > { %1548 = vadd.xlane.f32.xlu1 %v3936_v18  ;;  %3146 = vpow2.f32 %v1524_v21  ;;  %v1505_v17 = vsub.f32 %v3859_v14, %v1481_v49  ;;  %vm1356_vm14 = vcmp.lt.s32.totalorder %v3775_v47, %v3991_v22 }
 0x23c   : > { %3148 = vpow2.f32 %v1526_v28  ;;  %1667 = vmatpush.bf16.msra.mxu3 %v2828_v35 }
 0x23d   : > { %3150 = vpow2.f32 %v1522_v58  ;;  %v1528_v60 = vmul.f32 1.442695, %v1505_v17 }
 0x23f   : > { %v1088_v32 = vpop.f32.mrf.mxu1  ;;  %3152 = vpow2.f32 %v1528_v60 }
 0x240   : > { %1668 = vmatpush.bf16.msra.mxu3 %v2827_v52  ;;  %v4009_v52 = vadd.s32 120, %v3773_v40 }
 0x241   : > { %v3950_v31 = vpop.eup %3146 }
 0x242   : > { %1486 = vmax.xlane.f32.xlu0 %v3946_v45  ;;  %v3954_v30 = vpop.eup %3148  ;;  %vm1367_vm15 = vcmp.lt.s32.totalorder %v3775_v47, %v4009_v52 }
 0x243   : > { %v3972_v3 = vpop.eup %3150  ;;  %v1461_v20 = vpop.f32.mrf.mxu2 }
 0x244   : > { %1669 = vmatpush.bf16.msra.mxu3 %v2826_v0 }
 0x245   : > { %v3975_v23 = vpop.eup %3152 }
 0x248   : > { %1353 = vrot.lane.b32.xlu2 %v1086_v10, %s3376_s17 }
 0x24a   : > { %1556 = vadd.xlane.f32.xlu0 %v3950_v31  ;;  %v1483_v2 = vpop.xlane.xlu0 %1482 }
 0x24b   : > { %v1506_v39 = vsub.f32 %v3870_v25, %v1483_v2  ;;  %v2825_v25 = vld [vmem:[%s3594_s14 + $0x18] sm:$0xff] }
 0x24c   : > { %1670 = vmatpush.bf16.msra.mxu3 %v2825_v25 }
 0x24d   : > { %v1530_v14 = vmul.f32 1.442695, %v1506_v39  ;;  %v1463_v39 = vpop.f32.mrf.mxu2 }
 0x24f   : > { %3154 = vpow2.f32 %v1530_v14 }
 0x250   : > { %1671 = vmatpush.bf16.msra.mxu3 %v2824_v1 }
 0x252   : > { %1558 = vadd.xlane.f32.xlu0 %v3954_v30  ;;  %v1485_v13 = vpop.xlane.xlu1 %1484 }
 0x253   : > { %v1507_v19 = vsub.f32 %v3881_v29, %v1485_v13 }
 0x254   : > { %1364 = vrot.lane.b32.xlu1 %v1088_v32, %s4451_s30  ;;  %1672 = vmatpush.bf16.msra.mxu3 %v2823_v42  ;;  %s4090_s30 = scalar_lea.vmem [#allocation10], %s3575_s1  ;;  %s4463_s1 = smov 336  }
 0x255   : > { %v3984_v41 = vpop.eup %3154  ;;  %v1532_v26 = vmul.f32 1.442695, %v1507_v19 }
 0x258   : > { %1673 = vmatpush.bf16.msra.mxu3 %v2822_v11 }
 0x25d   : > { %v1361_v28 = vpop.permute.xlu0 %1360 }
 0x271   : > { %1488 = vmax.xlane.f32.xlu2 %v3962_v50 }
 0x279   : > { %1490 = vmax.xlane.f32.xlu2 %v3968_v4 }
 0x27e   : > { %1554 = vadd.xlane.f32.xlu1 %v3972_v3 }
 0x281   : > { %1560 = vadd.xlane.f32.xlu2 %v3975_v23 }
 0x286   : > { %1492 = vmax.xlane.f32.xlu1 %v3979_v63 }
 0x289   : > { %1562 = vadd.xlane.f32.xlu2 %v3984_v41 }
 0x2a3   : > { %v1551_v16 = vpop.xlane.xlu2 %1550 }
 0x2a5   : > { %v1547_v51 = vpop.xlane.xlu1 %1546 }
 0x2a6   : > { %3156 = vrcp.f32 %v1547_v51 }
 0x2ab   : > { %v1354_v21 = vpop.permute.xlu2 %1353 }
 0x2ac   : > { %v1357_v27 = vsel %vm1356_vm14, %v3919_v61, %v1354_v21  ;;  %v3157_v29 = vpop.eup %3156 }
 0x2ad   : > { %v4000_v10 = vadd.f32 %v1461_v20, %v1357_v27  ;;  %v1553_v9 = vpop.xlane.xlu0 %1552  ;;  %v1594_v35 = vmul.f32 %v3157_v29, %v3927_v12 }
 0x2ae   : > { %v1549_v32 = vpop.xlane.xlu1 %1548 }
 0x2af   : > { %3158 = vrcp.f32 %v1549_v32  ;;  %1494 = vmax.xlane.f32.xlu1 %v4000_v10 }
 0x2b0   : > { %3160 = vpow2.f32 %v1532_v26 }
 0x2b1   : > { %3162 = vrcp.f32 %v1553_v9 }
 0x2b2   : > { %3164 = vrcp.f32 %v1551_v16 }
 0x2b5   : > { %v3159_v34 = vpop.eup %3158  ;;  %v1487_v49 = vpop.xlane.xlu0 %1486 }
 0x2b6   : > { %v1595_v36 = vmul.f32 %v3159_v34, %v3936_v18  ;;  %v4005_v62 = vpop.eup %3160  ;;  %v1508_v59 = vsub.f32 %v3946_v45, %v1487_v49 }
 0x2b7   : > { %1564 = vadd.xlane.f32.xlu1 %v4005_v62  ;;  %v3163_v58 = vpop.eup %3162 }
 0x2b8   : > { %v1610_v61 = vpack.c.bf16 %v1595_v36, %v1594_v35  ;;  %v3165_v17 = vpop.eup %3164  ;;  %v1597_v12 = vmul.f32 %v3163_v58, %v3934_v5  ;;  %v1534_v2 = vmul.f32 1.442695, %v1508_v59  ;;  %v2998_v36 = vld [vmem:[%s3579_s16 + $0x40] sm:$0xff]  }
 0x2b9   : > { %v1596_v60 = vmul.f32 %v3165_v17, %v3925_v8  ;;  %v2882_v49 = vunpack.c.h.bf16 %v2998_v36 }
 0x2ba   : > { %1674 = vmatmul.bf16.vlgmr.msra.gmra.mxu3 %v1610_v61  ;;  %3166 = vpow2.f32 %v1534_v2 }
 0x2bb   : > { %v1611_v0 = vpack.c.bf16 %v1597_v12, %v1596_v60  ;;  %v613_v58 = vmul.f32 0.088378906, %v2882_v49 }
 0x2bd   : > { %v1557_v42 = vpop.xlane.xlu0 %1556  ;;  %v645_v12 = vpack.c.bf16 %v613_v58, %v613_v58 }
 0x2bf   : > { %v4044_v2 = vunpack.c.l.bf16 %v645_v12 }
 0x2c0   : > { %v4022_v45 = vpop.eup %3166 }
 0x2c5   : > { %v1559_v34 = vpop.xlane.xlu0 %1558 }
 0x2c6   : > { %v1365_v18 = vpop.permute.xlu1 %1364 }
 0x2c7   : > { %v1368_v14 = vsel %vm1367_vm15, %v1361_v28, %v1365_v18 }
 0x2c8   : > { %v4019_v6 = vadd.f32 %v1463_v39, %v1368_v14  ;;  %v714_v14 = vadd.f32 %v3629_v24, %v4044_v2 }
 0x2ca   : > { %1496 = vmax.xlane.f32.xlu0 %v4019_v6  ;;  %1679 = vmatmul.bf16.gmra.mxu3 %v1611_v0  ;;  %v746_v0 = vpack.c.bf16 %v714_v14, %v714_v14 }
 0x2d2   : > { %1566 = vadd.xlane.f32.xlu0 %v4022_v45 }
 0x2e4   : > { %v1489_v5 = vpop.xlane.xlu2 %1488 }
 0x2e5   : > { %v1509_v8 = vsub.f32 %v3962_v50, %v1489_v5 }
 0x2e7   : > { %v1536_v25 = vmul.f32 1.442695, %v1509_v8  ;;  %v810_v8 = vunpack.c.l.b16 %v746_v0 }
 0x2e9   : > { %3168 = vpow2.f32 %v1536_v25 }
 0x2ea   : > { %3170 = vrcp.f32 %v1557_v42 }
 0x2ec   : > { %v1491_v1 = vpop.xlane.xlu2 %1490 }
 0x2ed   : > { %v1510_v11 = vsub.f32 %v3968_v4, %v1491_v1 }
 0x2ef   : > { %v4027_v13 = vpop.eup %3168  ;;  %v1538_v16 = vmul.f32 1.442695, %v1510_v11 }
 0x2f0   : > { %1568 = vadd.xlane.f32.xlu2 %v4027_v13  ;;  %v3171_v19 = vpop.eup %3170 }
 0x2f1   : > { %v1555_v51 = vpop.xlane.xlu1 %1554  ;;  %3172 = vpow2.f32 %v1538_v16  ;;  %v1599_v27 = vmul.f32 %v3171_v19, %v3950_v31 }
 0x2f2   : > { %3174 = vrcp.f32 %v1555_v51 }
 0x2f4   : > { %v1561_v28 = vpop.xlane.xlu2 %1560 }
 0x2f7   : > { %v4030_v20 = vpop.eup %3172 }
 0x2f8   : > { %v3175_v21 = vpop.eup %3174  ;;  %1570 = vadd.xlane.f32.xlu1 %v4030_v20 }
 0x2f9   : > { %v1493_v50 = vpop.xlane.xlu1 %1492  ;;  %v1598_v4 = vmul.f32 %v3175_v21, %v3972_v3 }
 0x2fa   : > { %v1511_v26 = vsub.f32 %v3979_v63, %v1493_v50  ;;  %v2881_v63 = vunpack.c.l.bf16 %v2998_v36 }
 0x2fb   : > { %v1612_v29 = vpack.c.bf16 %v1599_v27, %v1598_v4 }
 0x2fc   : > { %v1540_v32 = vmul.f32 1.442695, %v1511_v26  ;;  %v612_v31 = vmul.f32 0.088378906, %v2881_v63  ;;  %v3000_v63 = vld [vmem:[%s3579_s16 + $0x50] sm:$0xff]   ;;  %v1563_v49 = vpop.xlane.xlu2 %1562 }
 0x2fd   : > { %1684 = vmatmul.bf16.gmra.mxu3 %v1612_v29 }
 0x2fe   : > { %3176 = vpow2.f32 %v1540_v32  ;;  %v644_v59 = vpack.c.bf16 %v612_v31, %v612_v31  ;;  %v2890_v31 = vunpack.c.h.bf16 %v3000_v63 }
 0x2ff   : > { %3178 = vrcp.f32 %v1561_v28 }
 0x300   : > { %3180 = vrcp.f32 %v1559_v34  ;;  %v4042_v60 = vunpack.c.l.bf16 %v644_v59 }
 0x302   : > { %v713_v39 = vadd.f32 %v3629_v24, %v4042_v60 }
 0x304   : > { %v4036_v9 = vpop.eup %3176 }
 0x305   : > { %v3179_v35 = vpop.eup %3178  ;;  %1572 = vadd.xlane.f32.xlu0 %v4036_v9 }
 0x306   : > { %v3181_v61 = vpop.eup %3180  ;;  %v1601_v3 = vmul.f32 %v3179_v35, %v3975_v23  ;;  %v745_v23 = vpack.c.bf16 %v713_v39, %v713_v39 }
 0x307   : > { %v1600_v17 = vmul.f32 %v3181_v61, %v3954_v30  ;;  %v2999_v30 = vld [vmem:[%s3579_s16 + $0x48] sm:$0xff]  }
 0x308   : > { %v809_v5 = vunpack.c.l.b16 %v745_v23  ;;  %v2885_v1 = vunpack.c.l.bf16 %v2999_v30  ;;  %v2886_v42 = vunpack.c.h.bf16 %v2999_v30 }
 0x309   : > { %v1613_v18 = vpack.c.bf16 %v1601_v3, %v1600_v17  ;;  %v2889_v3 = vunpack.c.l.bf16 %v3000_v63  ;;  %v617_v17 = vmul.f32 0.088378906, %v2890_v31 }
 0x30a   : > { %v833_v25 = vpack.c.b16 %v810_v8, %v809_v5  ;;  %v614_v11 = vmul.f32 0.088378906, %v2885_v1  ;;  %v615_v16 = vmul.f32 0.088378906, %v2886_v42 }
 0x30b   : > { %v616_v58 = vmul.f32 0.088378906, %v2889_v3 }
 0x30c   : > { %1001 = vmatmul.bf16.gmra.mxu0 %v833_v25  ;;  %1090 = vmatmul.bf16.gmra.mxu1 %v833_v25  ;;  %v646_v51 = vpack.c.bf16 %v614_v11, %v614_v11  ;;  %v647_v19 = vpack.c.bf16 %v615_v16, %v615_v16 }
 0x30d   : > { %1689 = vmatmul.bf16.gmra.mxu3 %v1613_v18  ;;  %v648_v12 = vpack.c.bf16 %v616_v58, %v616_v58  ;;  %v649_v18 = vpack.c.bf16 %v617_v17, %v617_v17 }
 0x30e   : > { %v4051_v21 = vunpack.c.l.bf16 %v646_v51  ;;  %v4053_v50 = vunpack.c.l.bf16 %v647_v19 }
 0x30f   : > { %v4061_v39 = vunpack.c.l.bf16 %v648_v12 }
 0x310   : > { %v715_v26 = vadd.f32 %v3629_v24, %v4051_v21  ;;  %v716_v4 = vadd.f32 %v3629_v24, %v4053_v50 }
 0x311   : > { %v717_v23 = vadd.f32 %v3629_v24, %v4061_v39 }
 0x312   : > { %v747_v27 = vpack.c.bf16 %v715_v26, %v715_v26  ;;  %v748_v28 = vpack.c.bf16 %v716_v4, %v716_v4  ;;  %v3001_v26 = vld [vmem:[%s3579_s16 + $0x58] sm:$0xff]  }
 0x313   : > { %v749_v8 = vpack.c.bf16 %v717_v23, %v717_v23  ;;  %v2893_v4 = vunpack.c.l.bf16 %v3001_v26 }
 0x314   : > { %v811_v29 = vunpack.c.l.b16 %v747_v27  ;;  %v812_v34 = vunpack.c.l.b16 %v748_v28  ;;  %v2894_v27 = vunpack.c.h.bf16 %v3001_v26  ;;  %v2837_v28 = vld [vmem:[%s3587_s26 + $0x78] sm:$0xff] }
 0x315   : > { %v813_v11 = vunpack.c.l.b16 %v749_v8  ;;  %1995 = vmatpush.bf16.xpose.msrb.mxu3 %v2837_v28  ;;  %v3002_v8 = vld [vmem:[%s3579_s16 + $0x60] sm:$0xff]   ;;  %v2835_v28 = vld [vmem:[%s3587_s26 + $0x68] sm:$0xff] }
 0x316   : > { %v834_v36 = vpack.c.b16 %v812_v34, %v811_v29  ;;  %v619_v29 = vmul.f32 0.088378906, %v2894_v27 }
 0x31c   : > { %1006 = vmatmul.bf16.gmra.mxu0 %v834_v36  ;;  %1095 = vmatmul.bf16.gmra.mxu1 %v834_v36 }
 0x322   : > { %v1495_v32 = vpop.xlane.xlu1 %1494 }
 0x323   : > { %v1512_v35 = vsub.f32 %v4000_v10, %v1495_v32  ;;  %v4063_v10 = vunpack.c.l.bf16 %v649_v18  ;;  %v618_v32 = vmul.f32 0.088378906, %v2893_v4 }
 0x325   : > { %v1542_v61 = vmul.f32 1.442695, %v1512_v35  ;;  %v718_v0 = vadd.f32 %v3629_v24, %v4063_v10  ;;  %v650_v34 = vpack.c.bf16 %v618_v32, %v618_v32  ;;  %v651_v35 = vpack.c.bf16 %v619_v29, %v619_v29 }
 0x327   : > { %3182 = vpow2.f32 %v1542_v61  ;;  %v750_v25 = vpack.c.bf16 %v718_v0, %v718_v0  ;;  %v4078_v61 = vunpack.c.l.bf16 %v651_v35  ;;  %v2836_v0 = vld [vmem:[%s3587_s26 + $0x70] sm:$0xff] }
 0x328   : > { %3184 = vrcp.f32 %v1563_v49  ;;  %1996 = vmatpush.bf16.xpose.msrb.mxu3 %v2836_v0 }
 0x329   : > { %v814_v16 = vunpack.c.l.b16 %v750_v25  ;;  %v720_v3 = vadd.f32 %v3629_v24, %v4078_v61  ;;  %v2898_v25 = vunpack.c.h.bf16 %v3002_v8 }
 0x32a   : > { %v1565_v59 = vpop.xlane.xlu1 %1564 }
 0x32b   : > { %3186 = vrcp.f32 %v1565_v59  ;;  %v835_v19 = vpack.c.b16 %v814_v16, %v813_v11  ;;  %v752_v17 = vpack.c.bf16 %v720_v3, %v720_v3 }
 0x32d   : > { %v4065_v14 = vpop.eup %3182  ;;  %1011 = vmatmul.bf16.gmra.mxu0 %v835_v19  ;;  %1100 = vmatmul.bf16.gmra.mxu1 %v835_v19  ;;  %v816_v12 = vunpack.c.l.b16 %v752_v17 }
 0x32e   : > { %1574 = vadd.xlane.f32.xlu2 %v4065_v14  ;;  %v3185_v5 = vpop.eup %3184 }
 0x32f   : > { %v1602_v1 = vmul.f32 %v3185_v5, %v3984_v41 }
 0x330   : > { %1997 = vmatpush.bf16.xpose.msrb.mxu3 %v2835_v28  ;;  %v2834_v28 = vld [vmem:[%s3587_s26 + $0x60] sm:$0xff] }
 0x331   : > { %v3187_v30 = vpop.eup %3186 }
 0x332   : > { %v1603_v42 = vmul.f32 %v3187_v30, %v4005_v62  ;;  %v4076_v62 = vunpack.c.l.bf16 %v650_v34 }
 0x334   : > { %v1614_v51 = vpack.c.bf16 %v1603_v42, %v1602_v1  ;;  %v719_v49 = vadd.f32 %v3629_v24, %v4076_v62  ;;  %v621_v42 = vmul.f32 0.088378906, %v2898_v25 }
 0x336   : > { %1694 = vmatmul.bf16.gmra.mxu3 %v1614_v51  ;;  %v751_v58 = vpack.c.bf16 %v719_v49, %v719_v49  ;;  %v653_v16 = vpack.c.bf16 %v621_v42, %v621_v42  ;;  %v3003_v49 = vld [vmem:[%s3579_s16 + $0x68] sm:$0xff]  }
 0x337   : > { %v2901_v3 = vunpack.c.l.bf16 %v3003_v49 }
 0x338   : > { %v815_v59 = vunpack.c.l.b16 %v751_v58  ;;  %v4096_v26 = vunpack.c.l.bf16 %v653_v16  ;;  %1998 = vmatpush.bf16.xpose.msrb.mxu3 %v2834_v28 }
 0x339   : > { %v622_v17 = vmul.f32 0.088378906, %v2901_v3 }
 0x33a   : > { %v836_v23 = vpack.c.b16 %v816_v12, %v815_v59  ;;  %v722_v27 = vadd.f32 %v3629_v24, %v4096_v26 }
 0x33b   : > { %v654_v12 = vpack.c.bf16 %v622_v17, %v622_v17 }
 0x33c   : > { %v754_v29 = vpack.c.bf16 %v722_v27, %v722_v27 }
 0x33d   : > { %v1675_v41 = vpop.f32.mrf.mxu3  ;;  %v1497_v36 = vpop.xlane.xlu0 %1496  ;;  %1016 = vmatmul.bf16.gmra.mxu0 %v836_v23  ;;  %1105 = vmatmul.bf16.gmra.mxu1 %v836_v23  ;;  %v4105_v0 = vunpack.c.l.bf16 %v654_v12 }
 0x33e   : > { %v1513_v63 = vsub.f32 %v4019_v6, %v1497_v36  ;;  %v2897_v6 = vunpack.c.l.bf16 %v3002_v8  ;;  %v818_v35 = vunpack.c.l.b16 %v754_v29 }
 0x33f   : > { %v723_v8 = vadd.f32 %v3629_v24, %v4105_v0 }
 0x340   : > { %v1544_v31 = vmul.f32 1.442695, %v1513_v63  ;;  %v620_v1 = vmul.f32 0.088378906, %v2897_v6 }
 0x342   : > { %3188 = vpow2.f32 %v1544_v31  ;;  %v652_v11 = vpack.c.bf16 %v620_v1, %v620_v1  ;;  %v2902_v31 = vunpack.c.h.bf16 %v3003_v49  ;;  %v755_v1 = vpack.c.bf16 %v723_v8, %v723_v8 }
 0x344   : > { %v4094_v19 = vunpack.c.l.bf16 %v652_v11  ;;  %v623_v59 = vmul.f32 0.088378906, %v2902_v31  ;;  %v819_v16 = vunpack.c.l.b16 %v755_v1 }
 0x345   : > { %v1677_v18 = vpop.f32.mrf.mxu3  ;;  %v1567_v58 = vpop.xlane.xlu0 %1566 }
 0x346   : > { %v2914_v5 = vpack.c.bf16 %v1677_v18, %v1675_v41  ;;  %v721_v4 = vadd.f32 %v3629_v24, %v4094_v19  ;;  %3190 = vrcp.f32 %v1567_v58  ;;  %v655_v18 = vpack.c.bf16 %v623_v59, %v623_v59 }
 0x348   : > { %v4087_v30 = vpop.eup %3188  ;;  %2915 = vst [vmem:[%s4090_s30] sm:$0xff] %v2914_v5   ;;  %v753_v32 = vpack.c.bf16 %v721_v4, %v721_v4  ;;  %v4107_v5 = vunpack.c.l.bf16 %v655_v18 }
 0x349   : > { %1576 = vadd.xlane.f32.xlu1 %v4087_v30 }
 0x34a   : > { %v817_v34 = vunpack.c.l.b16 %v753_v32  ;;  %v724_v6 = vadd.f32 %v3629_v24, %v4107_v5 }
 0x34c   : > { %v837_v36 = vpack.c.b16 %v818_v35, %v817_v34  ;;  %v3191_v25 = vpop.eup %3190  ;;  %v756_v42 = vpack.c.bf16 %v724_v6, %v724_v6  ;;  %v3004_v34 = vld [vmem:[%s3579_s16 + $0x70] sm:$0xff]   ;;  %v2833_v6 = vld [vmem:[%s3587_s26 + $0x58] sm:$0xff] }
 0x34d   : > { %v1680_v51 = vpop.f32.mrf.mxu3  ;;  %v1604_v4 = vmul.f32 %v3191_v25, %v4022_v45  ;;  %v2905_v35 = vunpack.c.l.bf16 %v3004_v34  ;;  %1999 = vmatpush.bf16.xpose.msrb.mxu3 %v2833_v6 }
 0x34e   : > { %1021 = vmatmul.bf16.gmra.mxu0 %v837_v36  ;;  %1110 = vmatmul.bf16.gmra.mxu1 %v837_v36 }
 0x34f   : > { %v624_v36 = vmul.f32 0.088378906, %v2905_v35 }
 0x351   : > { %v656_v49 = vpack.c.bf16 %v624_v36, %v624_v36 }
 0x353   : > { %v4117_v58 = vunpack.c.l.bf16 %v656_v49 }
 0x355   : > { %v1682_v41 = vpop.f32.mrf.mxu3 }
 0x356   : > { %v2919_v63 = vpack.c.bf16 %v1682_v41, %v1680_v51  ;;  %v820_v51 = vunpack.c.l.b16 %v756_v42  ;;  %v2906_v41 = vunpack.c.h.bf16 %v3004_v34 }
 0x358   : > { %3006 = vst [vmem:[%s4090_s30 + $0x8] sm:$0xff] %v2919_v63   ;;  %v838_v32 = vpack.c.b16 %v820_v51, %v819_v16  ;;  %v625_v63 = vmul.f32 0.088378906, %v2906_v41 }
 0x35a   : > { %v657_v3 = vpack.c.bf16 %v625_v63, %v625_v63 }
 0x35c   : > { %v4119_v45 = vunpack.c.l.bf16 %v657_v3 }
 0x35e   : > { %1026 = vmatmul.bf16.gmra.mxu0 %v838_v32  ;;  %1115 = vmatmul.bf16.gmra.mxu1 %v838_v32  ;;  %v726_v17 = vadd.f32 %v3629_v24, %v4119_v45 }
 0x360   : > { %v758_v18 = vpack.c.bf16 %v726_v17, %v726_v17 }
 0x362   : > { %v822_v8 = vunpack.c.l.b16 %v758_v18 }
 0x363   : > { %v1569_v23 = vpop.xlane.xlu2 %1568 }
 0x364   : > { %3192 = vrcp.f32 %v1569_v23 }
 0x36a   : > { %v3193_v11 = vpop.eup %3192 }
 0x36b   : > { %v1605_v27 = vmul.f32 %v3193_v11, %v4027_v13  ;;  %v1571_v31 = vpop.xlane.xlu1 %1570  ;;  %v725_v13 = vadd.f32 %v3629_v24, %v4117_v58 }
 0x36c   : > { %3194 = vrcp.f32 %v1571_v31 }
 0x36d   : > { %v1615_v29 = vpack.c.bf16 %v1605_v27, %v1604_v4  ;;  %v757_v12 = vpack.c.bf16 %v725_v13, %v725_v13  ;;  %v2832_v27 = vld [vmem:[%s3587_s26 + $0x50] sm:$0xff] }
 0x36e   : > { %2000 = vmatpush.bf16.xpose.msrb.mxu3 %v2832_v27  ;;  %v2830_v27 = vld [vmem:[%s3587_s26 + $0x40] sm:$0xff] }
 0x36f   : > { %1699 = vmatmul.bf16.gmra.mxu3 %v1615_v29  ;;  %v821_v23 = vunpack.c.l.b16 %v757_v12  ;;  %v2831_v29 = vld [vmem:[%s3587_s26 + $0x48] sm:$0xff]  ;;  %s4465_s26 = smov 376  }
 0x371   : > { %v839_v1 = vpack.c.b16 %v822_v8, %v821_v23 }
 0x372   : > { %v3195_v25 = vpop.eup %3194 }
 0x373   : > { %1031 = vmatmul.bf16.gmra.mxu0 %v839_v1  ;;  %1120 = vmatmul.bf16.gmra.mxu1 %v839_v1  ;;  %v1606_v11 = vmul.f32 %v3195_v25, %v4030_v20  ;;  %v3005_v20 = vld [vmem:[%s3579_s16 + $0x78] sm:$0xff]   ;;  %s4464_s16 = smov 360  }
 0x374   : > { %v2910_v36 = vunpack.c.h.bf16 %v3005_v20 }
 0x376   : > { %2001 = vmatpush.bf16.xpose.msrb.mxu3 %v2831_v29  ;;  %v627_v3 = vmul.f32 0.088378906, %v2910_v36 }
 0x378   : > { %v1573_v59 = vpop.xlane.xlu0 %1572  ;;  %v659_v17 = vpack.c.bf16 %v627_v3, %v627_v3 }
 0x379   : > { %3196 = vrcp.f32 %v1573_v59 }
 0x37a   : > { %v4139_v23 = vunpack.c.l.bf16 %v659_v17 }
 0x37c   : > { %v728_v6 = vadd.f32 %v3629_v24, %v4139_v23 }
 0x37e   : > { %v760_v1 = vpack.c.bf16 %v728_v6, %v728_v6  ;;  %2002 = vmatpush.bf16.xpose.msrb.mxu3 %v2830_v27  ;;  %v1781_v6 = vadd.f32 %v3688_v54, %v4042_v60  ;;  %v1783_v60 = vadd.f32 %v3688_v54, %v4051_v21  ;;  %v1786_v21 = vadd.f32 %v3688_v54, %v4063_v10 }
 0x37f   : > { %v3197_v42 = vpop.eup %3196  ;;  %v1788_v10 = vadd.f32 %v3688_v54, %v4078_v61 }
 0x380   : > { %v1607_v16 = vmul.f32 %v3197_v42, %v4036_v9  ;;  %v1685_v51 = vpop.f32.mrf.mxu3  ;;  %v2909_v9 = vunpack.c.l.bf16 %v3005_v20 }
 0x382   : > { %v1616_v4 = vpack.c.bf16 %v1607_v16, %v1606_v11  ;;  %v626_v49 = vmul.f32 0.088378906, %v2909_v9  ;;  %v824_v11 = vunpack.c.l.b16 %v760_v1 }
 0x384   : > { %1704 = vmatmul.bf16.gmra.mxu3 %v1616_v4  ;;  %v658_v13 = vpack.c.bf16 %v626_v49, %v626_v49 }
 0x386   : > { %v4137_v18 = vunpack.c.l.bf16 %v658_v13 }
 0x388   : > { %v1687_v28 = vpop.f32.mrf.mxu3  ;;  %v727_v8 = vadd.f32 %v3629_v24, %v4137_v18  ;;  %v1795_v53 = vadd.f32 %v3688_v54, %v4137_v18 }
 0x389   : > { %v2924_v32 = vpack.c.bf16 %v1687_v28, %v1685_v51  ;;  %v1002_v35 = vpop.f32.mrf.mxu0  ;;  %v1091_v41 = vpop.f32.mrf.mxu1 }
 0x38a   : > { %1806 = vrot.lane.b32.xlu0 %v1002_v35, %s3362_s11  ;;  %1809 = vrot.lane.b32.xlu2 %v1091_v41, %s3362_s11  ;;  %v759_v25 = vpack.c.bf16 %v727_v8, %v727_v8 }
 0x38b   : > { %3007 = vst [vmem:[%s4090_s30 + $0x10] sm:$0xff] %v2924_v32  }
 0x38c   : > { %v823_v42 = vunpack.c.l.b16 %v759_v25  ;;  %v1782_v25 = vadd.f32 %v3688_v54, %v4044_v2  ;;  %v1784_v2 = vadd.f32 %v3688_v54, %v4053_v50 }
 0x38e   : > { %v840_v4 = vpack.c.b16 %v824_v11, %v823_v42 }
 0x390   : > { %v1690_v34 = vpop.f32.mrf.mxu3  ;;  %1036 = vmatmul.bf16.gmra.mxu0 %v840_v4  ;;  %1125 = vmatmul.bf16.gmra.mxu1 %v840_v4 }
 0x391   : > { %v1004_v59 = vpop.f32.mrf.mxu0  ;;  %v1093_v12 = vpop.f32.mrf.mxu1 }
 0x392   : > { %1818 = vrot.lane.b32.xlu0 %v1093_v12, %s3363_s0  ;;  %1814 = vrot.lane.b32.xlu1 %v1004_v59, %s3363_s0 }
 0x398   : > { %v1692_v63 = vpop.f32.mrf.mxu3 }
 0x399   : > { %v2929_v31 = vpack.c.bf16 %v1692_v63, %v1690_v34  ;;  %v1007_v16 = vpop.f32.mrf.mxu0  ;;  %v1096_v51 = vpop.f32.mrf.mxu1 }
 0x39a   : > { %1827 = vrot.lane.b32.xlu0 %v1096_v51, %s3364_s29  ;;  %1823 = vrot.lane.b32.xlu2 %v1007_v16, %s3364_s29  ;;  %v1798_v51 = vpack.c.bf16 %v1784_v2, %v1783_v60 }
 0x39b   : > { %3008 = vst [vmem:[%s4090_s30 + $0x18] sm:$0xff] %v2929_v31  }
 0x3a1   : > { %v1009_v28 = vpop.f32.mrf.mxu0  ;;  %v1098_v32 = vpop.f32.mrf.mxu1 }
 0x3a2   : > { %1832 = vrot.lane.b32.xlu1 %v1009_v28, %s3365_s7  ;;  %1836 = vrot.lane.b32.xlu2 %v1098_v32, %s3365_s7  ;;  %v1575_v34 = vpop.xlane.xlu2 %1574  ;;  %v1785_v28 = vadd.f32 %v3688_v54, %v4061_v39  ;;  %v1787_v39 = vadd.f32 %v3688_v54, %v4076_v62  ;;  %v1790_v62 = vadd.f32 %v3688_v54, %v4096_v26 }
 0x3a3   : > { %3198 = vrcp.f32 %v1575_v34  ;;  %v1794_v26 = vadd.f32 %v3688_v54, %v4119_v45 }
 0x3a4   : > { %v1799_v50 = vpack.c.bf16 %v1786_v21, %v1785_v28 }
 0x3a9   : > { %v3199_v36 = vpop.eup %3198 }
 0x3aa   : > { %v1012_v24 = vpop.f32.mrf.mxu0  ;;  %v1101_v29 = vpop.f32.mrf.mxu1  ;;  %v1608_v31 = vmul.f32 %v3199_v36, %v4065_v14  ;;  %v1797_v14 = vpack.c.bf16 %v1782_v25, %v1781_v6 }
 0x3ab   : > { %1841 = vrot.lane.b32.xlu0 %v1012_v24, %s3366_s23  ;;  %1845 = vrot.lane.b32.xlu1 %v1101_v29, %s3366_s23 }
 0x3b2   : > { %v1014_v20 = vpop.f32.mrf.mxu0  ;;  %v1103_v9 = vpop.f32.mrf.mxu1 }
 0x3b3   : > { %1850 = vrot.lane.b32.xlu2 %v1014_v20, %s3367_s12  ;;  %1854 = vrot.lane.b32.xlu0 %v1103_v9, %s3367_s12  ;;  %v1800_v20 = vpack.c.bf16 %v1788_v10, %v1787_v39 }
 0x3b9   : > { %v1695_v35 = vpop.f32.mrf.mxu3 }
 0x3ba   : > { %v1017_v17 = vpop.f32.mrf.mxu0  ;;  %v1106_v12 = vpop.f32.mrf.mxu1 }
 0x3bb   : > { %1859 = vrot.lane.b32.xlu0 %v1017_v17, %s3368_s19  ;;  %v1791_v17 = vadd.f32 %v3688_v54, %v4105_v0 }
 0x3bc   : > { %v1577_v41 = vpop.xlane.xlu1 %1576 }
 0x3bd   : > { %3200 = vrcp.f32 %v1577_v41 }
 0x3c1   : > { %v1697_v63 = vpop.f32.mrf.mxu3 }
 0x3c2   : > { %v2934_v3 = vpack.c.bf16 %v1697_v63, %v1695_v35  ;;  %v1019_v8 = vpop.f32.mrf.mxu0  ;;  %v1108_v1 = vpop.f32.mrf.mxu1 }
 0x3c3   : > { %v3201_v49 = vpop.eup %3200  ;;  %1863 = vrot.lane.b32.xlu0 %v1106_v12, %s3368_s19 }
 0x3c4   : > { %v1609_v13 = vmul.f32 %v3201_v49, %v4087_v30  ;;  %3009 = vst [vmem:[%s4090_s30 + $0x20] sm:$0xff] %v2934_v3  }
 0x3c6   : > { %v1617_v59 = vpack.c.bf16 %v1609_v13, %v1608_v31  ;;  %v1789_v31 = vadd.f32 %v3688_v54, %v4094_v19  ;;  %v1793_v19 = vadd.f32 %v3688_v54, %v4117_v58 }
 0x3c8   : > { %1709 = vmatmul.bf16.gmra.mxu3 %v1617_v59  ;;  %v1801_v61 = vpack.c.bf16 %v1790_v62, %v1789_v31  ;;  %v1792_v59 = vadd.f32 %v3688_v54, %v4107_v5  ;;  %v1803_v6 = vpack.c.bf16 %v1794_v26, %v1793_v19 }
 0x3ca   : > { %v1802_v12 = vpack.c.bf16 %v1792_v59, %v1791_v17 }
 0x3cb   : > { %v1022_v42 = vpop.f32.mrf.mxu0  ;;  %1868 = vrot.lane.b32.xlu0 %v1019_v8, %s3370_s18  ;;  %v1111_v30 = vpop.f32.mrf.mxu1 }
 0x3cc   : > { %1877 = vrot.lane.b32.xlu1 %v1022_v42, %s3369_s8  ;;  %1881 = vrot.lane.b32.xlu2 %v1111_v30, %s3369_s8 }
 0x3d3   : > { %v1024_v11 = vpop.f32.mrf.mxu0  ;;  %1872 = vrot.lane.b32.xlu0 %v1108_v1, %s3370_s18  ;;  %v1113_v16 = vpop.f32.mrf.mxu1 }
 0x3d4   : > { %1886 = vrot.lane.b32.xlu1 %v1024_v11, %s3371_s15  ;;  %1890 = vrot.lane.b32.xlu2 %v1113_v16, %s3371_s15 }
 0x3d8   : > { %2003 = vmatmul.bf16.vlgmr.msrb.gmra.mxu3 %v1797_v14 }
 0x3db   : > { %v1027_v4 = vpop.f32.mrf.mxu0  ;;  %v1116_v27 = vpop.f32.mrf.mxu1 }
 0x3dc   : > { %1899 = vrot.lane.b32.xlu0 %v1116_v27, %s4463_s1  ;;  %1895 = vrot.lane.b32.xlu2 %v1027_v4, %s4463_s1 }
 0x3e3   : > { %v1029_v24 = vpop.f32.mrf.mxu0  ;;  %v1118_v29 = vpop.f32.mrf.mxu1 }
 0x3e4   : > { %1904 = vrot.lane.b32.xlu2 %v1029_v24, %s3373_s13  ;;  %v1810_v5 = vpop.permute.xlu2 %1809 }
 0x3e8   : > { %2008 = vmatmul.bf16.gmra.mxu3 %v1798_v51 }
 0x3ec   : > { %1908 = vrot.lane.b32.xlu2 %v1118_v29, %s3373_s13 }
 0x3f0   : > { %v1032_v41 = vpop.f32.mrf.mxu0  ;;  %v1121_v36 = vpop.f32.mrf.mxu1 }
 0x3f1   : > { %1913 = vrot.lane.b32.xlu1 %v1032_v41, %s3374_s28 }
 0x3f2   : > { %v1700_v32 = vpop.f32.mrf.mxu3 }
 0x3f4   : > { %1917 = vrot.lane.b32.xlu2 %v1121_v36, %s3374_s28  ;;  %v1824_v27 = vpop.permute.xlu2 %1823  ;;  %v1796_v36 = vadd.f32 %v3688_v54, %v4139_v23 }
 0x3f8   : > { %2013 = vmatmul.bf16.gmra.mxu3 %v1799_v50  ;;  %v1034_v63 = vpop.f32.mrf.mxu0  ;;  %v1123_v13 = vpop.f32.mrf.mxu1 }
 0x3f9   : > { %1922 = vrot.lane.b32.xlu0 %v1034_v63, %s4464_s16  ;;  %1926 = vrot.lane.b32.xlu1 %v1123_v13, %s4464_s16  ;;  %v1804_v63 = vpack.c.bf16 %v1796_v36, %v1795_v53 }
 0x3fa   : > { %v1702_v34 = vpop.f32.mrf.mxu3 }
 0x3fb   : > { %v2939_v35 = vpack.c.bf16 %v1702_v34, %v1700_v32 }
 0x3fc   : > { %v1807_v25 = vpop.permute.xlu0 %1806  ;;  %v1837_v50 = vpop.permute.xlu2 %1836 }
 0x3fd   : > { %3010 = vst [vmem:[%s4090_s30 + $0x28] sm:$0xff] %v2939_v35   ;;  %v1811_v11 = vsel %vm1202_vm1, %v1807_v25, %v1810_v5 }
 0x404   : > { %v1819_v0 = vpop.permute.xlu0 %1818  ;;  %v1815_v45 = vpop.permute.xlu1 %1814 }
 0x405   : > { %v1820_v16 = vsel %vm1213_vm4, %v1815_v45, %v1819_v0 }
 0x407   : > { %v1705_v9 = vpop.f32.mrf.mxu3 }
 0x408   : > { %2018 = vmatmul.bf16.gmra.mxu3 %v1800_v20 }
 0x40c   : > { %v1828_v30 = vpop.permute.xlu0 %1827 }
 0x40d   : > { %v1037_v8 = vpop.f32.mrf.mxu0  ;;  %v1829_v40 = vsel %vm1224_vm0, %v1824_v27, %v1828_v30 }
 0x40e   : > { %1931 = vrot.lane.b32.xlu0 %v1037_v8, %s3376_s17 }
 0x40f   : > { %v1707_v49 = vpop.f32.mrf.mxu3 }
 0x410   : > { %v2944_v3 = vpack.c.bf16 %v1707_v49, %v1705_v9  ;;  %v1851_v9 = vpop.permute.xlu2 %1850 }
 0x412   : > { %3011 = vst [vmem:[%s4090_s30 + $0x30] sm:$0xff] %v2944_v3  }
 0x414   : > { %v1833_v24 = vpop.permute.xlu1 %1832 }
 0x415   : > { %v1838_v29 = vsel %vm1235_vm2, %v1833_v24, %v1837_v50 }
 0x418   : > { %2023 = vmatmul.bf16.gmra.mxu3 %v1801_v61 }
 0x41d   : > { %v1842_v58 = vpop.permute.xlu0 %1841  ;;  %v1846_v41 = vpop.permute.xlu1 %1845 }
 0x41e   : > { %v1847_v48 = vsel %vm1246_vm3, %v1842_v58, %v1846_v41 }
 0x425   : > { %v1855_v28 = vpop.permute.xlu0 %1854 }
 0x426   : > { %v1856_v49 = vsel %vm1257_vm6, %v1851_v9, %v1855_v28  ;;  %v1882_v59 = vpop.permute.xlu2 %1881 }
 0x428   : > { %2028 = vmatmul.bf16.gmra.mxu3 %v1802_v12 }
 0x42d   : > { %v1860_v56 = vpop.permute.xlu0 %1859 }
 0x42e   : > { %v1891_v26 = vpop.permute.xlu2 %1890 }
 0x435   : > { %v1864_v10 = vpop.permute.xlu0 %1863 }
 0x436   : > { %v1865_v62 = vsel %vm1268_vm5, %v1860_v56, %v1864_v10  ;;  %v1896_v15 = vpop.permute.xlu2 %1895 }
 0x438   : > { %2033 = vmatmul.bf16.gmra.mxu3 %v1803_v6 }
 0x43d   : > { %v1869_v31 = vpop.permute.xlu0 %1868 }
 0x43e   : > { %v1878_v17 = vpop.permute.xlu1 %1877 }
 0x43f   : > { %v1883_v37 = vsel %vm1290_vm8, %v1878_v17, %v1882_v59  ;;  %v1039_v59 = vpop.f32.mrf.mxu0 }
 0x445   : > { %v1873_v54 = vpop.permute.xlu0 %1872 }
 0x446   : > { %v1874_v38 = vsel %vm1279_vm7, %v1869_v31, %v1873_v54  ;;  %v1887_v19 = vpop.permute.xlu1 %1886 }
 0x447   : > { %v1892_v7 = vsel %vm1301_vm9, %v1887_v19, %v1891_v26  ;;  %v2845_v26 = vld [vmem:[%s3594_s14 + $0x78] sm:$0xff] }
 0x448   : > { %2038 = vmatmul.bf16.gmra.mxu3 %v1804_v63  ;;  %2244 = vmatpush.bf16.msrb.mxu2 %v2845_v26 }
 0x44b   : > { %v1710_v1 = vpop.f32.mrf.mxu3 }
 0x44e   : > { %v1900_v30 = vpop.permute.xlu0 %1899 }
 0x44f   : > { %v1901_v36 = vsel %vm1312_vm13, %v1896_v15, %v1900_v30  ;;  %v2842_v15 = vld [vmem:[%s3594_s14 + $0x60] sm:$0xff] }
 0x453   : > { %v1712_v14 = vpop.f32.mrf.mxu3 }
 0x454   : > { %v2949_v42 = vpack.c.bf16 %v1712_v14, %v1710_v1  ;;  %v1126_v1 = vpop.f32.mrf.mxu1  ;;  %v1905_v14 = vpop.permute.xlu2 %1904 }
 0x456   : > { %3012 = vst [vmem:[%s4090_s30 + $0x38] sm:$0xff] %v2949_v42  }
 0x45b   : > { %v2004_v60 = vpop.f32.mrf.mxu3 }
 0x45c   : > { %v4208_v2 = vadd.f32 %v2004_v60, %v1811_v11  ;;  %v1128_v0 = vpop.f32.mrf.mxu1  ;;  %v1909_v5 = vpop.permute.xlu2 %1908 }
 0x45d   : > { %v1910_v56 = vsel %vm1323_vm10, %v1905_v14, %v1909_v5  ;;  %v2839_v5 = vld [vmem:[%s3594_s14 + $0x48] sm:$0xff] }
 0x45e   : > { %2044 = vmax.xlane.f32.xlu1 %v4208_v2 }
 0x463   : > { %v2006_v51 = vpop.f32.mrf.mxu3  ;;  %v1914_v42 = vpop.permute.xlu1 %1913 }
 0x464   : > { %v4214_v4 = vadd.f32 %v2006_v51, %v1820_v16  ;;  %v1918_v60 = vpop.permute.xlu2 %1917 }
 0x466   : > { %2046 = vmax.xlane.f32.xlu2 %v4214_v4 }
 0x46b   : > { %v2009_v21 = vpop.f32.mrf.mxu3  ;;  %v4271_v11 = vpop.permute.xlu1 %1926 }
 0x46c   : > { %v4220_v32 = vadd.f32 %v2009_v21, %v1829_v40  ;;  %v4273_v44 = vpop.permute.xlu0 %1922 }
 0x46e   : > { %2048 = vmax.xlane.f32.xlu0 %v4220_v32 }
 0x473   : > { %v2011_v34 = vpop.f32.mrf.mxu3 }
 0x474   : > { %v4226_v35 = vadd.f32 %v2011_v34, %v1838_v29 }
 0x476   : > { %2050 = vmax.xlane.f32.xlu2 %v4226_v35 }
 0x47b   : > { %v2014_v39 = vpop.f32.mrf.mxu3 }
 0x47c   : > { %v4232_v20 = vadd.f32 %v2014_v39, %v1847_v48  ;;  %v1919_v39 = vsel %vm1334_vm11, %v1914_v42, %v1918_v60  ;;  %v2840_v42 = vld [vmem:[%s3594_s14 + $0x50] sm:$0xff] }
 0x47e   : > { %2052 = vmax.xlane.f32.xlu1 %v4232_v20 }
 0x480   : > { %v4276_v27 = vpop.permute.xlu0 %1931 }
 0x483   : > { %v2016_v55 = vpop.f32.mrf.mxu3 }
 0x484   : > { %v4242_v3 = vadd.f32 %v2016_v55, %v1856_v49 }
 0x486   : > { %2054 = vmax.xlane.f32.xlu0 %v4242_v3 }
 0x48b   : > { %v2019_v18 = vpop.f32.mrf.mxu3 }
 0x48c   : > { %v4248_v13 = vadd.f32 %v2019_v18, %v1865_v62 }
 0x48e   : > { %2056 = vmax.xlane.f32.xlu2 %v4248_v13 }
 0x493   : > { %v2021_v23 = vpop.f32.mrf.mxu3 }
 0x494   : > { %v4254_v61 = vadd.f32 %v2021_v23, %v1874_v38 }
 0x496   : > { %2058 = vmax.xlane.f32.xlu0 %v4254_v61 }
 0x49b   : > { %v2024_v12 = vpop.f32.mrf.mxu3 }
 0x49c   : > { %v4260_v8 = vadd.f32 %v2024_v12, %v1883_v37 }
 0x49e   : > { %2060 = vmax.xlane.f32.xlu1 %v4260_v8 }
 0x4a3   : > { %v2026_v6 = vpop.f32.mrf.mxu3 }
 0x4a4   : > { %v4266_v25 = vadd.f32 %v2026_v6, %v1892_v7  ;;  %v2844_v7 = vld [vmem:[%s3594_s14 + $0x70] sm:$0xff] }
 0x4a5   : > { %2245 = vmatpush.bf16.msrb.mxu2 %v2844_v7 }
 0x4a6   : > { %2062 = vmax.xlane.f32.xlu0 %v4266_v25  ;;  %1935 = vrot.lane.b32.xlu2 %v1126_v1, %s3376_s17 }
 0x4ab   : > { %v2029_v16 = vpop.f32.mrf.mxu3 }
 0x4ac   : > { %v4305_v63 = vadd.f32 %v2029_v16, %v1901_v36  ;;  %v2838_v16 = vld [vmem:[%s3594_s14 + $0x40] sm:$0xff] }
 0x4b3   : > { %v2031_v24 = vpop.f32.mrf.mxu3 }
 0x4b4   : > { %v4285_v29 = vadd.f32 %v2031_v24, %v1910_v56 }
 0x4ba   : > { %1944 = vrot.lane.b32.xlu0 %v1128_v0, %s4465_s26  ;;  %v2841_v0 = vld [vmem:[%s3594_s14 + $0x58] sm:$0xff] }
 0x4d1   : > { %v2045_v58 = vpop.xlane.xlu1 %2044 }
 0x4d2   : > { %v2076_v45 = vsub.f32 %v4208_v2, %v2045_v58 }
 0x4d4   : > { %v2092_v51 = vmul.f32 1.442695, %v2076_v45 }
 0x4d6   : > { %3202 = vpow2.f32 %v2092_v51 }
 0x4d9   : > { %v2047_v28 = vpop.xlane.xlu2 %2046 }
 0x4da   : > { %v2077_v40 = vsub.f32 %v4214_v4, %v2047_v28  ;;  %v2034_v4 = vpop.f32.mrf.mxu3 }
 0x4db   : > { %v4295_v10 = vadd.f32 %v2034_v4, %v1919_v39 }
 0x4dc   : > { %v4279_v21 = vpop.eup %3202  ;;  %v2094_v50 = vmul.f32 1.442695, %v2077_v40 }
 0x4dd   : > { %2124 = vadd.xlane.f32.xlu1 %v4279_v21 }
 0x4de   : > { %3204 = vpow2.f32 %v2094_v50 }
 0x4e1   : > { %v2049_v2 = vpop.xlane.xlu0 %2048 }
 0x4e2   : > { %v2078_v34 = vsub.f32 %v4220_v32, %v2049_v2  ;;  %v2036_v30 = vpop.f32.mrf.mxu3 }
 0x4e4   : > { %v4288_v41 = vpop.eup %3204  ;;  %v2096_v48 = vmul.f32 1.442695, %v2078_v34  ;;  %2066 = vmax.xlane.f32.xlu0 %v4285_v29 }
 0x4e5   : > { %2126 = vadd.xlane.f32.xlu1 %v4288_v41 }
 0x4e6   : > { %3206 = vpow2.f32 %v2096_v48 }
 0x4e9   : > { %v2051_v33 = vpop.xlane.xlu2 %2050 }
 0x4ea   : > { %v2079_v9 = vsub.f32 %v4226_v35, %v2051_v33  ;;  %v2039_v40 = vpop.f32.mrf.mxu3 }
 0x4ec   : > { %v4298_v53 = vpop.eup %3206  ;;  %v2098_v32 = vmul.f32 1.442695, %v2079_v9  ;;  %2068 = vmax.xlane.f32.xlu0 %v4295_v10 }
 0x4ed   : > { %2128 = vadd.xlane.f32.xlu2 %v4298_v53 }
 0x4ee   : > { %3208 = vpow2.f32 %v2098_v32 }
 0x4f1   : > { %v2053_v54 = vpop.xlane.xlu1 %2052 }
 0x4f2   : > { %v2080_v6 = vsub.f32 %v4232_v20, %v2053_v54  ;;  %v1928_v20 = vsel %vm1345_vm12, %v4273_v44, %v4271_v11 }
 0x4f3   : > { %v4344_v60 = vadd.f32 %v2036_v30, %v1928_v20 }
 0x4f4   : > { %v4307_v43 = vpop.eup %3208  ;;  %v2100_v1 = vmul.f32 1.442695, %v2080_v6 }
 0x4f5   : > { %2130 = vadd.xlane.f32.xlu1 %v4307_v43  ;;  %2064 = vmax.xlane.f32.xlu2 %v4305_v63 }
 0x4f9   : > { %v2055_v35 = vpop.xlane.xlu0 %2054 }
 0x4fa   : > { %v2081_v49 = vsub.f32 %v4242_v3, %v2055_v35 }
 0x4fc   : > { %v2102_v55 = vmul.f32 1.442695, %v2081_v49 }
 0x4fe   : > { %3210 = vpow2.f32 %v2102_v55 }
 0x501   : > { %v2057_v31 = vpop.xlane.xlu2 %2056 }
 0x502   : > { %v2082_v62 = vsub.f32 %v4248_v13, %v2057_v31 }
 0x504   : > { %v4313_v18 = vpop.eup %3210  ;;  %v2104_v57 = vmul.f32 1.442695, %v2082_v62 }
 0x505   : > { %2134 = vadd.xlane.f32.xlu2 %v4313_v18 }
 0x506   : > { %3212 = vpow2.f32 %v2104_v57 }
 0x509   : > { %v2059_v38 = vpop.xlane.xlu0 %2058  ;;  %v1936_v45 = vpop.permute.xlu2 %1935 }
 0x50a   : > { %v2083_v23 = vsub.f32 %v4254_v61, %v2059_v38  ;;  %v1937_v28 = vsel %vm1356_vm14, %v4276_v27, %v1936_v45 }
 0x50b   : > { %v4353_v46 = vadd.f32 %v2039_v40, %v1937_v28 }
 0x50c   : > { %v4317_v17 = vpop.eup %3212  ;;  %v2106_v3 = vmul.f32 1.442695, %v2083_v23  ;;  %v2041_v23 = vpop.f32.mrf.mxu3 }
 0x50d   : > { %2136 = vadd.xlane.f32.xlu2 %v4317_v17 }
 0x50e   : > { %3214 = vpow2.f32 %v2106_v3  ;;  %1940 = vrot.lane.b32.xlu1 %v1039_v59, %s4465_s26 }
 0x511   : > { %v2061_v13 = vpop.xlane.xlu1 %2060 }
 0x512   : > { %v2084_v37 = vsub.f32 %v4260_v8, %v2061_v13  ;;  %v2843_v8 = vld [vmem:[%s3594_s14 + $0x68] sm:$0xff]  ;;  %s2327_s14 = scalar_lea.sflag [#allocation4], %s3572_s20 }
 0x513   : > { %2246 = vmatpush.bf16.msrb.mxu2 %v2843_v8 }
 0x514   : > { %v4322_v12 = vpop.eup %3214  ;;  %v2108_v19 = vmul.f32 1.442695, %v2084_v37 }
 0x515   : > { %2138 = vadd.xlane.f32.xlu0 %v4322_v12 }
 0x516   : > { %3216 = vpow2.f32 %v2108_v19 }
 0x517   : > { %3218 = vpow2.f32 %v2100_v1  ;;  %2247 = vmatpush.bf16.msrb.mxu2 %v2842_v15 }
 0x519   : > { %v2063_v58 = vpop.xlane.xlu0 %2062 }
 0x51a   : > { %v2085_v51 = vsub.f32 %v4266_v25, %v2063_v58 }
 0x51b   : > { %2248 = vmatpush.bf16.msrb.mxu2 %v2841_v0 }
 0x51c   : > { %v4325_v61 = vpop.eup %3216  ;;  %v2110_v50 = vmul.f32 1.442695, %v2085_v51 }
 0x51d   : > { %2140 = vadd.xlane.f32.xlu0 %v4325_v61  ;;  %v4334_v14 = vpop.eup %3218 }
 0x51e   : > { %3220 = vpow2.f32 %v2110_v50 }
 0x51f   : > { %2249 = vmatpush.bf16.msrb.mxu2 %v2840_v42 }
 0x523   : > { %2250 = vmatpush.bf16.msrb.mxu2 %v2839_v5 }
 0x524   : > { %v4356_v44 = vpop.eup %3220 }
 0x527   : > { %2251 = vmatpush.bf16.msrb.mxu2 %v2838_v16 }
 0x52c   : > { %v1945_v11 = vpop.permute.xlu0 %1944 }
 0x538   : > { %2132 = vadd.xlane.f32.xlu1 %v4334_v14 }
 0x540   : > { %2070 = vmax.xlane.f32.xlu1 %v4344_v60 }
 0x548   : > { %2072 = vmax.xlane.f32.xlu1 %v4353_v46 }
 0x550   : > { %v2125_v24 = vpop.xlane.xlu1 %2124  ;;  %2142 = vadd.xlane.f32.xlu1 %v4356_v44 }
 0x551   : > { %3222 = vrcp.f32 %v2125_v24 }
 0x557   : > { %v2067_v25 = vpop.xlane.xlu0 %2066  ;;  %v3223_v27 = vpop.eup %3222 }
 0x558   : > { %v2087_v56 = vsub.f32 %v4285_v29, %v2067_v25  ;;  %v2127_v2 = vpop.xlane.xlu1 %2126  ;;  %v2172_v39 = vmul.f32 %v3223_v27, %v4279_v21 }
 0x559   : > { %3224 = vrcp.f32 %v2127_v2 }
 0x55a   : > { %v2114_v22 = vmul.f32 1.442695, %v2087_v56 }
 0x55c   : > { %3226 = vpow2.f32 %v2114_v22 }
 0x55f   : > { %v3225_v34 = vpop.eup %3224  ;;  %v2069_v48 = vpop.xlane.xlu0 %2068 }
 0x560   : > { %v2088_v4 = vsub.f32 %v4295_v10, %v2069_v48  ;;  %v2173_v33 = vmul.f32 %v3225_v34, %v4288_v41  ;;  %v2129_v29 = vpop.xlane.xlu2 %2128 }
 0x562   : > { %v4363_v9 = vpop.eup %3226  ;;  %v2116_v32 = vmul.f32 1.442695, %v2088_v4  ;;  %v2188_v36 = vpack.c.bf16 %v2173_v33, %v2172_v39 }
 0x563   : > { %2146 = vadd.xlane.f32.xlu0 %v4363_v9 }
 0x564   : > { %3228 = vpow2.f32 %v2116_v32  ;;  %2252 = vmatmul.bf16.vlgmr.msrb.gmra.mxu2 %v2188_v36 }
 0x565   : > { %3230 = vrcp.f32 %v2129_v29 }
 0x568   : > { %v2131_v35 = vpop.xlane.xlu1 %2130  ;;  %v2065_v62 = vpop.xlane.xlu2 %2064 }
 0x569   : > { %3232 = vrcp.f32 %v2131_v35  ;;  %v2086_v57 = vsub.f32 %v4305_v63, %v2065_v62 }
 0x56a   : > { %v4366_v49 = vpop.eup %3228 }
 0x56b   : > { %2148 = vadd.xlane.f32.xlu1 %v4366_v49  ;;  %v3231_v10 = vpop.eup %3230  ;;  %v2112_v38 = vmul.f32 1.442695, %v2086_v57 }
 0x56c   : > { %v2174_v41 = vmul.f32 %v3231_v10, %v4298_v53 }
 0x56d   : > { %3234 = vpow2.f32 %v2112_v38 }
 0x56f   : > { %v3233_v21 = vpop.eup %3232 }
 0x570   : > { %v2175_v55 = vmul.f32 %v3233_v21, %v4307_v43 }
 0x572   : > { %v2189_v31 = vpack.c.bf16 %v2175_v55, %v2174_v41 }
 0x573   : > { %v4375_v13 = vpop.eup %3234 }
 0x574   : > { %2257 = vmatmul.bf16.gmra.mxu2 %v2189_v31 }
 0x578   : > { %v2135_v53 = vpop.xlane.xlu2 %2134 }
 0x579   : > { %3236 = vrcp.f32 %v2135_v53 }
 0x57f   : > { %v3237_v37 = vpop.eup %3236 }
 0x580   : > { %v1941_v54 = vpop.permute.xlu1 %1940  ;;  %v2177_v7 = vmul.f32 %v3237_v37, %v4313_v18  ;;  %v2137_v1 = vpop.xlane.xlu2 %2136 }
 0x581   : > { %v1946_v3 = vsel %vm1367_vm15, %v1941_v54, %v1945_v11 }
 0x582   : > { %v2042_v59 = vadd.f32 %v2041_v23, %v1946_v3 }
 0x584   : > { %2074 = vmax.xlane.f32.xlu2 %v2042_v59 }
 0x588   : > { %v2139_v47 = vpop.xlane.xlu0 %2138 }
 0x58c   : > { %2144 = vadd.xlane.f32.xlu2 %v4375_v13 }
 0x590   : > { %v2141_v16 = vpop.xlane.xlu0 %2140 }
 0x5ab   : > { %v2133_v43 = vpop.xlane.xlu1 %2132 }
 0x5ac   : > { %3238 = vrcp.f32 %v2133_v43 }
 0x5ad   : > { %3240 = vrcp.f32 %v2139_v47 }
 0x5b2   : > { %v3239_v63 = vpop.eup %3238 }
 0x5b3   : > { %v2071_v19 = vpop.xlane.xlu1 %2070  ;;  %v2176_v26 = vmul.f32 %v3239_v63, %v4334_v14  ;;  %v3241_v42 = vpop.eup %3240 }
 0x5b4   : > { %v2089_v52 = vsub.f32 %v4344_v60, %v2071_v19  ;;  %v2179_v18 = vmul.f32 %v3241_v42, %v4322_v12 }
 0x5b5   : > { %v2190_v6 = vpack.c.bf16 %v2177_v7, %v2176_v26 }
 0x5b6   : > { %v2118_v8 = vmul.f32 1.442695, %v2089_v52 }
 0x5b7   : > { %2262 = vmatmul.bf16.gmra.mxu2 %v2190_v6 }
 0x5b8   : > { %3242 = vpow2.f32 %v2118_v8 }
 0x5b9   : > { %3244 = vrcp.f32 %v2137_v1 }
 0x5bb   : > { %v2073_v15 = vpop.xlane.xlu1 %2072 }
 0x5bc   : > { %v2090_v0 = vsub.f32 %v4353_v46, %v2073_v15 }
 0x5be   : > { %v3243_v30 = vpop.eup %3242  ;;  %v2120_v5 = vmul.f32 1.442695, %v2090_v0 }
 0x5bf   : > { %2150 = vadd.xlane.f32.xlu2 %v3243_v30  ;;  %v3245_v14 = vpop.eup %3244 }
 0x5c0   : > { %3246 = vpow2.f32 %v2120_v5  ;;  %v2178_v20 = vmul.f32 %v3245_v14, %v4317_v17 }
 0x5c2   : > { %v2191_v58 = vpack.c.bf16 %v2179_v18, %v2178_v20 }
 0x5c3   : > { %v2143_v60 = vpop.xlane.xlu1 %2142 }
 0x5c4   : > { %3248 = vrcp.f32 %v2143_v60 }
 0x5c5   : > { %3250 = vrcp.f32 %v2141_v16 }
 0x5c6   : > { %v4384_v45 = vpop.eup %3246 }
 0x5c7   : > { %2267 = vmatmul.bf16.gmra.mxu2 %v2191_v58  ;;  %2152 = vadd.xlane.f32.xlu0 %v4384_v45 }
 0x5ca   : > { %v3249_v51 = vpop.eup %3248 }
 0x5cb   : > { %v3251_v28 = vpop.eup %3250  ;;  %v2181_v40 = vmul.f32 %v3249_v51, %v4356_v44 }
 0x5cc   : > { %v2180_v50 = vmul.f32 %v3251_v28, %v4325_v61 }
 0x5ce   : > { %v2192_v12 = vpack.c.bf16 %v2181_v40, %v2180_v50 }
 0x5d6   : > { %v2147_v22 = vpop.xlane.xlu0 %2146 }
 0x5d7   : > { %2272 = vmatmul.bf16.gmra.mxu2 %v2192_v12 }
 0x5de   : > { %v2149_v36 = vpop.xlane.xlu1 %2148 }
 0x5e7   : > { %v2253_v17 = vpop.f32.mrf.mxu2 }
 0x5ef   : > { %v2255_v46 = vpop.f32.mrf.mxu2 }
 0x5f0   : > { %v2954_v11 = vpack.c.bf16 %v2255_v46, %v2253_v17 }
 0x5f2   : > { %3013 = vst [vmem:[%s4090_s30 + $0x40] sm:$0xff] %v2954_v11  }
 0x5f7   : > { %v2258_v24 = vpop.f32.mrf.mxu2  ;;  %v2075_v25 = vpop.xlane.xlu2 %2074 }
 0x5f8   : > { %v2091_v56 = vsub.f32 %v2042_v59, %v2075_v25 }
 0x5fa   : > { %v2122_v2 = vmul.f32 1.442695, %v2091_v56 }
 0x5fc   : > { %3252 = vpow2.f32 %v2122_v2 }
 0x5fd   : > { %3254 = vrcp.f32 %v2147_v22 }
 0x5ff   : > { %v2260_v27 = vpop.f32.mrf.mxu2  ;;  %v2145_v34 = vpop.xlane.xlu2 %2144 }
 0x600   : > { %v2959_v48 = vpack.c.bf16 %v2260_v27, %v2258_v24  ;;  %3256 = vrcp.f32 %v2145_v34 }
 0x601   : > { %3258 = vrcp.f32 %v2149_v36 }
 0x602   : > { %v3253_v44 = vpop.eup %3252  ;;  %3014 = vst [vmem:[%s4090_s30 + $0x48] sm:$0xff] %v2959_v48  }
 0x603   : > { %2154 = vadd.xlane.f32.xlu1 %v3253_v44  ;;  %v3255_v61 = vpop.eup %3254 }
 0x604   : > { %v2183_v33 = vmul.f32 %v3255_v61, %v4363_v9 }
 0x606   : > { %v3257_v4 = vpop.eup %3256 }
 0x607   : > { %v2182_v39 = vmul.f32 %v3257_v4, %v4375_v13  ;;  %v3259_v35 = vpop.eup %3258 }
 0x608   : > { %v2184_v41 = vmul.f32 %v3259_v35, %v4366_v49 }
 0x609   : > { %v2193_v32 = vpack.c.bf16 %v2183_v33, %v2182_v39 }
 0x60b   : > { %2277 = vmatmul.bf16.gmra.mxu2 %v2193_v32 }
 0x632   : > { %v2151_v29 = vpop.xlane.xlu2 %2150 }
 0x633   : > { %3260 = vrcp.f32 %v2151_v29 }
 0x639   : > { %v3261_v10 = vpop.eup %3260 }
 0x63a   : > { %v2263_v21 = vpop.f32.mrf.mxu2  ;;  %v2185_v55 = vmul.f32 %v3261_v10, %v3243_v30  ;;  %v2153_v13 = vpop.xlane.xlu0 %2152 }
 0x63b   : > { %3262 = vrcp.f32 %v2153_v13 }
 0x63c   : > { %v2194_v31 = vpack.c.bf16 %v2185_v55, %v2184_v41 }
 0x63e   : > { %2282 = vmatmul.bf16.gmra.mxu2 %v2194_v31 }
 0x641   : > { %v3263_v49 = vpop.eup %3262 }
 0x642   : > { %v2265_v62 = vpop.f32.mrf.mxu2  ;;  %v2186_v37 = vmul.f32 %v3263_v49, %v4384_v45 }
 0x643   : > { %v2964_v57 = vpack.c.bf16 %v2265_v62, %v2263_v21 }
 0x645   : > { %3015 = vst [vmem:[%s4090_s30 + $0x50] sm:$0xff] %v2964_v57  }
 0x64a   : > { %v2268_v9 = vpop.f32.mrf.mxu2 }
 0x652   : > { %v2270_v54 = vpop.f32.mrf.mxu2 }
 0x653   : > { %v2969_v38 = vpack.c.bf16 %v2270_v54, %v2268_v9 }
 0x655   : > { %3016 = vst [vmem:[%s4090_s30 + $0x58] sm:$0xff] %v2969_v38  }
 0x65a   : > { %v2273_v23 = vpop.f32.mrf.mxu2 }
 0x662   : > { %v2275_v3 = vpop.f32.mrf.mxu2 }
 0x663   : > { %v2974_v59 = vpack.c.bf16 %v2275_v3, %v2273_v23 }
 0x665   : > { %3017 = vst [vmem:[%s4090_s30 + $0x60] sm:$0xff] %v2974_v59  }
 0x676   : > { %v2155_v53 = vpop.xlane.xlu1 %2154 }
 0x677   : > { %3264 = vrcp.f32 %v2155_v53 }
 0x67d   : > { %v3265_v43 = vpop.eup %3264 }
 0x67e   : > { %v2187_v63 = vmul.f32 %v3265_v43, %v3253_v44 }
 0x680   : > { %v2195_v19 = vpack.c.bf16 %v2187_v63, %v2186_v37 }
 0x682   : > { %2287 = vmatmul.bf16.gmra.mxu2 %v2195_v19 }
 0x68e   : > { %v2278_v26 = vpop.f32.mrf.mxu2 }
 0x696   : > { %v2280_v7 = vpop.f32.mrf.mxu2 }
 0x697   : > { %v2979_v47 = vpack.c.bf16 %v2280_v7, %v2278_v26 }
 0x699   : > { %3018 = vst [vmem:[%s4090_s30 + $0x68] sm:$0xff] %v2979_v47  }
 0x6c1   : > { %v2283_v52 = vpop.f32.mrf.mxu2 }
 0x6c9   : > { %v2285_v6 = vpop.f32.mrf.mxu2 }
 0x6ca   : > { %v2984_v8 = vpack.c.bf16 %v2285_v6, %v2283_v52 }
 0x6cc   : > { %3019 = vst [vmem:[%s4090_s30 + $0x70] sm:$0xff] %v2984_v8  }
 0x705   : > { %v2288_v1 = vpop.f32.mrf.mxu2 }
 0x70d   : > { %v2290_v15 = vpop.f32.mrf.mxu2 }
 0x70e   : > { %v2989_v0 = vpack.c.bf16 %v2290_v15, %v2288_v1 }
 0x710   : > { %3020 = vst [vmem:[%s4090_s30 + $0x78] sm:$0xff] %v2989_v0  }
 0x711   : > { %s2846_s11 = sshll.u32 %s3441_s25, 6  ;;  %s2349_s0 = sshll.u32 %s4090_s30, 4  ;;  %s2350_s0 = int_to_ptr.vmem [resolvable:$true] %s2349_s0 }
 0x712   : > { %s2338_s23 = scalar_lea.hbm %s4445_s6, %s2846_s11  ;;  %s3378_s19 = smov 1024  }
 0x713   : > { %s2351_s12 = sshll.u32 %s2338_s23, 4  ;;  %3050 = sst [smem:[#allocation18]] (%p3468_p9), %s3378_s19  ;;  %s2352_s12 = int_to_ptr.hbm [resolvable:$true] %s2351_s12 }
 0x714   : > { %s3379_s20 = smov 2048   ;;  %s3380_s8 = smov 16  }
 0x715   : > { %3051 = sst [smem:[#allocation18 + $0x1]] (%p3468_p9), %s3379_s20  ;;  %s3381_s25 = smov 64  }
 0x716   : > { %3052 = sst [smem:[#allocation18 + $0x2]] (%p3468_p9), %s3380_s8  ;;  %s3382_s18 = smov 4  }
 0x717   : > { %3053 = sst [smem:[#allocation18 + $0x3]] (%p3468_p9), %s3381_s25  ;;  %s3383_s15 = smov [#allocation17]  }
 0x718   : > { %3054 = sst [smem:[#allocation18 + $0x4]] (%p3468_p9), %s3381_s25  ;;  %s3384_s17 = smov 0  }
 0x719   : > { %3055 = sst [smem:[#allocation18 + $0x5]] (%p3468_p9), %s3382_s18 }
 0x71a   : > { %3056 = dma.general (%p3468_p9), %s2350_s0, 2048, %s2352_s12, %s2327_s14, %s3383_s15, [#allocation18], %s3384_s17, 0  }
 0x71b PF: > { %s2379_s13 = sand.u32 1, %s3328_s21   ;;  %p3059_p6 = pnand %p2524_p11, %p3472_p10 }
 0x71c   : > { %s2380_s28 = scalar_lea.sflag [#allocation4], %s2379_s13 }
 0x71d   : > { %p3060_p13 = pneg %p3059_p6 }
 0x71f   : > { %3323 = dma.done.wait (%p3060_p13), %s2380_s28, 2048  }
 0x720   : > { %3325 = vsyncadd (%p3060_p13), %s2380_s28, 4294965248  ;;  %s4466_s30 = sld [smem:[#allocation26_spill]]  ;;  %p25_p0 = scmp.ge.s32.totalorder %s3445_s27, 4  }
 0x721   : > { %s4467_s23 = sld [smem:[#allocation27_spill]]  ;;  %s4468_s21 = smov %s3332_s22 }
 0x722   : > { %s4470_s24 = smov %s3445_s27  ;;  %27 = sbr.rel (!%p25_p0) target bundleno = 12 (0xc), region = 155 }
 0x726   : > { %s4469_s22 = smov %s4466_s30 }
 0x727   :  { %2386 = vsyncpa [#allocation3], 1 }
 0x728   :  { %2388 = vsyncpa [#allocation3 + $0x1], 1 }
 0x729   :  { %2389 = vsyncpa [#allocation6], 1 }
 0x72a   :  { %2391 = vsyncpa [#allocation6 + $0x1], 1 }
 0x72b   :  { %2392 = vsyncpa [#allocation9], 1 }
 0x72c   :  { %2394 = vsyncpa [#allocation9 + $0x1], 1 }
 0x72d   :  { %2395 = vsyncpa [#allocation4], 1 }
 0x72e   :  { %2397 = vsyncpa [#allocation4 + $0x1], 1 }

</bundles_post_ra>
